<compile_context>
chip_gen: v6e
topology: v6e:2x2x1
jax: 0.10.0
libtpu: 0.0.40
codegen_flags: <defaults>
</compile_context>

<pallas_src>
import jax
import jax.numpy as jnp
from jax.experimental import pallas as pl
from jax.experimental.pallas import tpu as pltpu

_LANE = 128            # vreg lane width (fast axis)
_TILE_ROWS = 4096      # 4096 x 128 x 4B = 2 MiB per f32 block (fits all generations,
                       # double-buffered in+out = 8 MiB < 16 MiB v5e scoped default)
_SMALL_BYTES = 1 << 20  # below ~1 MiB, launch + per-step overhead dominates -> bypass


def _identity_copy_kernel(x_ref, o_ref):
    # Straight VMEM tile copy; BlockSpec pipelining overlaps the HBM DMAs.
    o_ref[...] = x_ref[...]


def identity_forward(x: jax.Array) -> jax.Array:
    """Pallas equivalent of Identity.forward: returns x (same shape & dtype)."""
    n = x.size
    itemsize = jnp.dtype(x.dtype).itemsize

    # Identity is semantically a no-op. For shapes where a Pallas copy would only add
    # work (tiny tensors dominated by fixed launch / per-step cost, or lane-ragged sizes
    # that would need a wrapper-side pad + slice -> ~3x HBM traffic), return x directly.
    if n == 0 or n * itemsize < _SMALL_BYTES or n % _LANE != 0:
        return x

    rows = n // _LANE
    tile_rows = min(rows, _TILE_ROWS)
    # (8,128) constraint holds: the block is either the full row extent or 4096 rows,
    # which is a multiple of the sublane packing quantum for every dtype (8/16/32).

    x2 = x.reshape(rows, _LANE)  # contiguous reshape: free, no extra HBM pass

    out2 = pl.pallas_call(
        _identity_copy_kernel,
        out_shape=jax.ShapeDtypeStruct((rows, _LANE), x.dtype),
        grid_spec=pl.GridSpec(
            grid=(pl.cdiv(rows, tile_rows),),  # ragged last block handled by Pallas
            in_specs=[pl.BlockSpec((tile_rows, _LANE), lambda i: (i, 0))],
            out_specs=pl.BlockSpec((tile_rows, _LANE), lambda i: (i, 0)),
        ),
        # Let XLA alias the output buffer onto the input when it is donatable:
        # Identity then costs ~0 HBM traffic instead of 2*n bytes.
        input_output_aliases={0: 0},
        compiler_params=pltpu.CompilerParams(
            dimension_semantics=("parallel",),
        ),
        cost_estimate=pl.CostEstimate(
            flops=0, transcendentals=0, bytes_accessed=2 * n * itemsize
        ),
    )(x2)

    return out2.reshape(x.shape)


if __name__ == "__main__":
    key = jax.random.PRNGKey(0)

    # 1) Module's test_forward shape (batch=2, in_dim=16, in_channels=4): tiny, takes the
    #    no-op bypass path (the correct and cheapest Identity).
    x_small = jax.random.normal(key, (2, 16, 4), dtype=jnp.float32)
    out_small = jax.block_until_ready(identity_forward(x_small))
    assert out_small.shape == x_small.shape and out_small.dtype == x_small.dtype
    assert bool(jnp.array_equal(out_small, x_small)), "identity mismatch (bypass path)"

    # 2) Large, lane-aligned f32 tensor: exercises the Pallas copy kernel, single tile.
    x_big = jax.random.normal(jax.random.PRNGKey(1), (4, 512, 256), dtype=jnp.float32)
    out_big = jax.block_until_ready(identity_forward(x_big))
    assert bool(jnp.array_equal(out_big, x_big)), "identity mismatch (kernel path)"

    # 3) Multi-step grid with a ragged last block (rows=4608, tile=4096, grid=2).
    x_ragged = jax.random.normal(jax.random.PRNGKey(2), (9, 256, 256), dtype=jnp.float32)
    out_ragged = jax.block_until_ready(identity_forward(x_ragged))
    assert bool(jnp.array_equal(out_ragged, x_ragged)), "identity mismatch (ragged grid)"

    # 4) bf16: packed dtype, multi-step grid (rows=8192, tile=4096, grid=2).
    x_bf16 = jax.random.normal(
        jax.random.PRNGKey(3), (4, 1024, 256), dtype=jnp.float32
    ).astype(jnp.bfloat16)
    out_bf16 = jax.block_until_ready(identity_forward(x_bf16))
    assert out_bf16.dtype == jnp.bfloat16
    assert bool(jnp.array_equal(out_bf16, x_bf16)), "identity mismatch (bf16 path)"

    print("KERNEL_OK")
</pallas_src>

<mosaic_0001>
module attributes {stable_mosaic.version = 11 : i64} {
  func.func @_identity_copy_kernel(%arg0: i32, %arg1: memref<4096x128xf32, #tpu.memory_space<vmem>>, %arg2: memref<4096x128xf32, #tpu.memory_space<vmem>>) attributes {dimension_semantics = [#tpu.dimension_semantics<parallel>], iteration_bounds = array<i64: 1>, scalar_prefetch = 0 : i64, scratch_operands = 0 : i64, tpu.core_type = #tpu.core_type<tc>, window_params = [{transform_indices = @transform_0, window_bounds = array<i64: 4096, 128>}, {transform_indices = @transform_1, window_bounds = array<i64: 4096, 128>}]} {
    %c0 = arith.constant 0 : index
    %c0_0 = arith.constant 0 : index
    %0 = vector.load %arg1[%c0, %c0_0] : memref<4096x128xf32, #tpu.memory_space<vmem>>, vector<4096x128xf32>
    %c0_1 = arith.constant 0 : index
    %c0_2 = arith.constant 0 : index
    %1 = vector.load %arg2[%c0_1, %c0_2] : memref<4096x128xf32, #tpu.memory_space<vmem>>, vector<4096x128xf32>
    tpu.vector_store %arg2[%c0_1, %c0_2], %0 {strides = array<i32>} : memref<4096x128xf32, #tpu.memory_space<vmem>>, vector<4096x128xf32>,
    return
  }
  func.func @transform_0(%arg0: i32) -> (i32, i32) {
    %c0_i32 = arith.constant 0 : i32
    %c0_i32_0 = arith.constant 0 : i32
    return %arg0, %c0_i32 : i32, i32
  }
  func.func @transform_1(%arg0: i32) -> (i32, i32) {
    %c0_i32 = arith.constant 0 : i32
    %c0_i32_0 = arith.constant 0 : i32
    return %arg0, %c0_i32 : i32, i32
  }
}

</mosaic_0001>

<bundles_post_ra>
// kernel: tpu_custom_call.1
= control target key start
LH: loop header
LB: loop body
LE: loop exit
PB: predicated region body
PF: predicated region fallthrough
CT: control target
= control target key end

     0   :  { %6 = vsyncpa [#allocation3], 0  ;;  %s1138_s0 = inlined_call_operand.hbm [shape: f32[4096,128], index: 0, kind: input, shape index: {}, may-alias: {0,1}]   ;;  %s1139_s1 = inlined_call_operand.hbm [shape: f32[4096,128], index: 1, kind: output, shape index: {}, may-alias: {0,1}]  }
   0x1   :  { %7 = vsyncpa [#allocation4], 0  ;;  %s1112_s6 = smov [#allocation2]  }
   0x2   :  { %s13_s7 = sshll.u32 %s1112_s6, 4  ;;  %s14_s7 = int_to_ptr.vmem [resolvable:$true] %s13_s7 }
   0x3   :  { %s1076_s8 = scalar_lea.vmem %s14_s7, 65536  ;;  %p1081_p1 = scmp.lt.s32.totalorder %s14_s7, %s14_s7 }
   0x4   :  { %p1077_p0 = scmp.ne.s32.totalorder %s14_s7, %s1076_s8  ;;  %p1082_p2 = scmp.lt.s32.totalorder %s1076_s8, %s1076_s8 }
   0x6   :  { %p1083_p3 = por %p1082_p2, %p1081_p1 }
   0x8   :  { %p1084_p4 = pnand %p1083_p3, %p1077_p0 }
   0xa   :  { %1087 = shalt.err (!%p1084_p4)
}
   0xb   :  { %s1113_s9 = smov 128   ;;  %s1114_s10 = smov 8  }
   0xc   :  { %19 = dma.hbm_to_vmem [thread:$0]  %s1138_s0, 65536, %s14_s7, [#allocation3], %s1113_s9, %s1113_s9, %s1114_s10  }
   0xd   :  { %1108 = dma.done.wait [#allocation3], 65536  }
   0xe   :  { %1109 = vsyncadd [#allocation3], 4294901760  ;;  %v23_v0 = vld [vmem:[#allocation2] sm:$0xff]  ;;  %v24_v1 = vld [vmem:[#allocation2 + $0x8] sm:$0xff]  ;;  %s1115_s0 = smov [#allocation5]  }
   0xf   :  { %v25_v2 = vld [vmem:[#allocation2 + $0x10] sm:$0xff]  ;;  %535 = vst [vmem:[#allocation5] sm:$0xff] %v23_v0  ;;  %536 = vst [vmem:[#allocation5 + $0x8] sm:$0xff] %v24_v1  ;;  %v26_v3 = vld [vmem:[#allocation2 + $0x18] sm:$0xff]  ;;  %s1052_s13 = sshll.u32 %s1115_s0, 4  ;;  %s1053_s13 = int_to_ptr.vmem [resolvable:$true] %s1052_s13 }
  0x10   :  { %537 = vst [vmem:[#allocation5 + $0x10] sm:$0xff] %v25_v2  ;;  %v27_v4 = vld [vmem:[#allocation2 + $0x20] sm:$0xff]  ;;  %v28_v5 = vld [vmem:[#allocation2 + $0x28] sm:$0xff]  ;;  %538 = vst [vmem:[#allocation5 + $0x18] sm:$0xff] %v26_v3  ;;  %s1088_s14 = scalar_lea.vmem %s1053_s13, 65536  ;;  %p1093_p6 = scmp.lt.s32.totalorder %s1053_s13, %s1053_s13 }
  0x11   :  { %539 = vst [vmem:[#allocation5 + $0x20] sm:$0xff] %v27_v4  ;;  %540 = vst [vmem:[#allocation5 + $0x28] sm:$0xff] %v28_v5  ;;  %v29_v6 = vld [vmem:[#allocation2 + $0x30] sm:$0xff]  ;;  %v30_v7 = vld [vmem:[#allocation2 + $0x38] sm:$0xff]  ;;  %p1089_p5 = scmp.ne.s32.totalorder %s1053_s13, %s1088_s14  ;;  %p1094_p7 = scmp.lt.s32.totalorder %s1088_s14, %s1088_s14 }
  0x12   :  { %v31_v8 = vld [vmem:[#allocation2 + $0x40] sm:$0xff]  ;;  %541 = vst [vmem:[#allocation5 + $0x30] sm:$0xff] %v29_v6  ;;  %542 = vst [vmem:[#allocation5 + $0x38] sm:$0xff] %v30_v7  ;;  %v32_v9 = vld [vmem:[#allocation2 + $0x48] sm:$0xff] }
  0x13   :  { %543 = vst [vmem:[#allocation5 + $0x40] sm:$0xff] %v31_v8  ;;  %v33_v10 = vld [vmem:[#allocation2 + $0x50] sm:$0xff]  ;;  %v34_v11 = vld [vmem:[#allocation2 + $0x58] sm:$0xff]  ;;  %544 = vst [vmem:[#allocation5 + $0x48] sm:$0xff] %v32_v9  ;;  %p1095_p8 = por %p1094_p7, %p1093_p6 }
  0x14   :  { %545 = vst [vmem:[#allocation5 + $0x50] sm:$0xff] %v33_v10  ;;  %546 = vst [vmem:[#allocation5 + $0x58] sm:$0xff] %v34_v11  ;;  %v35_v12 = vld [vmem:[#allocation2 + $0x60] sm:$0xff]  ;;  %v36_v13 = vld [vmem:[#allocation2 + $0x68] sm:$0xff] }
  0x15   :  { %v37_v14 = vld [vmem:[#allocation2 + $0x70] sm:$0xff]  ;;  %547 = vst [vmem:[#allocation5 + $0x60] sm:$0xff] %v35_v12  ;;  %548 = vst [vmem:[#allocation5 + $0x68] sm:$0xff] %v36_v13  ;;  %v38_v15 = vld [vmem:[#allocation2 + $0x78] sm:$0xff]  ;;  %p1096_p9 = pnand %p1095_p8, %p1089_p5 }
  0x16   :  { %549 = vst [vmem:[#allocation5 + $0x70] sm:$0xff] %v37_v14  ;;  %v39_v16 = vld [vmem:[#allocation2 + $0x80] sm:$0xff]  ;;  %v40_v17 = vld [vmem:[#allocation2 + $0x88] sm:$0xff]  ;;  %550 = vst [vmem:[#allocation5 + $0x78] sm:$0xff] %v38_v15 }
  0x17   :  { %551 = vst [vmem:[#allocation5 + $0x80] sm:$0xff] %v39_v16  ;;  %552 = vst [vmem:[#allocation5 + $0x88] sm:$0xff] %v40_v17  ;;  %v41_v18 = vld [vmem:[#allocation2 + $0x90] sm:$0xff]  ;;  %v42_v19 = vld [vmem:[#allocation2 + $0x98] sm:$0xff] }
  0x18   :  { %v43_v20 = vld [vmem:[#allocation2 + $0xa0] sm:$0xff]  ;;  %553 = vst [vmem:[#allocation5 + $0x90] sm:$0xff] %v41_v18  ;;  %554 = vst [vmem:[#allocation5 + $0x98] sm:$0xff] %v42_v19  ;;  %v44_v21 = vld [vmem:[#allocation2 + $0xa8] sm:$0xff] }
  0x19   :  { %555 = vst [vmem:[#allocation5 + $0xa0] sm:$0xff] %v43_v20  ;;  %v45_v22 = vld [vmem:[#allocation2 + $0xb0] sm:$0xff]  ;;  %v46_v23 = vld [vmem:[#allocation2 + $0xb8] sm:$0xff]  ;;  %556 = vst [vmem:[#allocation5 + $0xa8] sm:$0xff] %v44_v21 }
  0x1a   :  { %557 = vst [vmem:[#allocation5 + $0xb0] sm:$0xff] %v45_v22  ;;  %558 = vst [vmem:[#allocation5 + $0xb8] sm:$0xff] %v46_v23  ;;  %v47_v24 = vld [vmem:[#allocation2 + $0xc0] sm:$0xff]  ;;  %v48_v25 = vld [vmem:[#allocation2 + $0xc8] sm:$0xff] }
  0x1b   :  { %v49_v26 = vld [vmem:[#allocation2 + $0xd0] sm:$0xff]  ;;  %559 = vst [vmem:[#allocation5 + $0xc0] sm:$0xff] %v47_v24  ;;  %560 = vst [vmem:[#allocation5 + $0xc8] sm:$0xff] %v48_v25  ;;  %v50_v27 = vld [vmem:[#allocation2 + $0xd8] sm:$0xff] }
  0x1c   :  { %561 = vst [vmem:[#allocation5 + $0xd0] sm:$0xff] %v49_v26  ;;  %v51_v28 = vld [vmem:[#allocation2 + $0xe0] sm:$0xff]  ;;  %v52_v29 = vld [vmem:[#allocation2 + $0xe8] sm:$0xff]  ;;  %562 = vst [vmem:[#allocation5 + $0xd8] sm:$0xff] %v50_v27 }
  0x1d   :  { %563 = vst [vmem:[#allocation5 + $0xe0] sm:$0xff] %v51_v28  ;;  %564 = vst [vmem:[#allocation5 + $0xe8] sm:$0xff] %v52_v29  ;;  %v53_v30 = vld [vmem:[#allocation2 + $0xf0] sm:$0xff]  ;;  %v54_v31 = vld [vmem:[#allocation2 + $0xf8] sm:$0xff] }
  0x1e   :  { %v55_v32 = vld [vmem:[#allocation2 + $0x100] sm:$0xff]  ;;  %565 = vst [vmem:[#allocation5 + $0xf0] sm:$0xff] %v53_v30  ;;  %566 = vst [vmem:[#allocation5 + $0xf8] sm:$0xff] %v54_v31  ;;  %v56_v33 = vld [vmem:[#allocation2 + $0x108] sm:$0xff] }
  0x1f   :  { %567 = vst [vmem:[#allocation5 + $0x100] sm:$0xff] %v55_v32  ;;  %v57_v34 = vld [vmem:[#allocation2 + $0x110] sm:$0xff]  ;;  %v58_v35 = vld [vmem:[#allocation2 + $0x118] sm:$0xff]  ;;  %568 = vst [vmem:[#allocation5 + $0x108] sm:$0xff] %v56_v33 }
  0x20   :  { %569 = vst [vmem:[#allocation5 + $0x110] sm:$0xff] %v57_v34  ;;  %570 = vst [vmem:[#allocation5 + $0x118] sm:$0xff] %v58_v35  ;;  %v59_v36 = vld [vmem:[#allocation2 + $0x120] sm:$0xff]  ;;  %v60_v37 = vld [vmem:[#allocation2 + $0x128] sm:$0xff] }
  0x21   :  { %v61_v38 = vld [vmem:[#allocation2 + $0x130] sm:$0xff]  ;;  %571 = vst [vmem:[#allocation5 + $0x120] sm:$0xff] %v59_v36  ;;  %572 = vst [vmem:[#allocation5 + $0x128] sm:$0xff] %v60_v37  ;;  %v62_v39 = vld [vmem:[#allocation2 + $0x138] sm:$0xff] }
  0x22   :  { %573 = vst [vmem:[#allocation5 + $0x130] sm:$0xff] %v61_v38  ;;  %v63_v40 = vld [vmem:[#allocation2 + $0x140] sm:$0xff]  ;;  %v64_v41 = vld [vmem:[#allocation2 + $0x148] sm:$0xff]  ;;  %574 = vst [vmem:[#allocation5 + $0x138] sm:$0xff] %v62_v39 }
  0x23   :  { %575 = vst [vmem:[#allocation5 + $0x140] sm:$0xff] %v63_v40  ;;  %576 = vst [vmem:[#allocation5 + $0x148] sm:$0xff] %v64_v41  ;;  %v65_v42 = vld [vmem:[#allocation2 + $0x150] sm:$0xff]  ;;  %v66_v43 = vld [vmem:[#allocation2 + $0x158] sm:$0xff] }
  0x24   :  { %v67_v44 = vld [vmem:[#allocation2 + $0x160] sm:$0xff]  ;;  %577 = vst [vmem:[#allocation5 + $0x150] sm:$0xff] %v65_v42  ;;  %578 = vst [vmem:[#allocation5 + $0x158] sm:$0xff] %v66_v43  ;;  %v68_v45 = vld [vmem:[#allocation2 + $0x168] sm:$0xff] }
  0x25   :  { %579 = vst [vmem:[#allocation5 + $0x160] sm:$0xff] %v67_v44  ;;  %v69_v46 = vld [vmem:[#allocation2 + $0x170] sm:$0xff]  ;;  %v70_v47 = vld [vmem:[#allocation2 + $0x178] sm:$0xff]  ;;  %580 = vst [vmem:[#allocation5 + $0x168] sm:$0xff] %v68_v45 }
  0x26   :  { %581 = vst [vmem:[#allocation5 + $0x170] sm:$0xff] %v69_v46  ;;  %582 = vst [vmem:[#allocation5 + $0x178] sm:$0xff] %v70_v47  ;;  %v71_v48 = vld [vmem:[#allocation2 + $0x180] sm:$0xff]  ;;  %v72_v49 = vld [vmem:[#allocation2 + $0x188] sm:$0xff] }
  0x27   :  { %v73_v50 = vld [vmem:[#allocation2 + $0x190] sm:$0xff]  ;;  %583 = vst [vmem:[#allocation5 + $0x180] sm:$0xff] %v71_v48  ;;  %584 = vst [vmem:[#allocation5 + $0x188] sm:$0xff] %v72_v49  ;;  %v74_v51 = vld [vmem:[#allocation2 + $0x198] sm:$0xff] }
  0x28   :  { %585 = vst [vmem:[#allocation5 + $0x190] sm:$0xff] %v73_v50  ;;  %v75_v52 = vld [vmem:[#allocation2 + $0x1a0] sm:$0xff]  ;;  %v76_v53 = vld [vmem:[#allocation2 + $0x1a8] sm:$0xff]  ;;  %586 = vst [vmem:[#allocation5 + $0x198] sm:$0xff] %v74_v51 }
  0x29   :  { %587 = vst [vmem:[#allocation5 + $0x1a0] sm:$0xff] %v75_v52  ;;  %588 = vst [vmem:[#allocation5 + $0x1a8] sm:$0xff] %v76_v53  ;;  %v77_v54 = vld [vmem:[#allocation2 + $0x1b0] sm:$0xff]  ;;  %v78_v55 = vld [vmem:[#allocation2 + $0x1b8] sm:$0xff] }
  0x2a   :  { %v79_v56 = vld [vmem:[#allocation2 + $0x1c0] sm:$0xff]  ;;  %589 = vst [vmem:[#allocation5 + $0x1b0] sm:$0xff] %v77_v54  ;;  %590 = vst [vmem:[#allocation5 + $0x1b8] sm:$0xff] %v78_v55  ;;  %v80_v57 = vld [vmem:[#allocation2 + $0x1c8] sm:$0xff] }
  0x2b   :  { %591 = vst [vmem:[#allocation5 + $0x1c0] sm:$0xff] %v79_v56  ;;  %v81_v58 = vld [vmem:[#allocation2 + $0x1d0] sm:$0xff]  ;;  %v82_v59 = vld [vmem:[#allocation2 + $0x1d8] sm:$0xff]  ;;  %592 = vst [vmem:[#allocation5 + $0x1c8] sm:$0xff] %v80_v57 }
  0x2c   :  { %593 = vst [vmem:[#allocation5 + $0x1d0] sm:$0xff] %v81_v58  ;;  %594 = vst [vmem:[#allocation5 + $0x1d8] sm:$0xff] %v82_v59  ;;  %v83_v60 = vld [vmem:[#allocation2 + $0x1e0] sm:$0xff]  ;;  %v84_v61 = vld [vmem:[#allocation2 + $0x1e8] sm:$0xff] }
  0x2d   :  { %v85_v62 = vld [vmem:[#allocation2 + $0x1f0] sm:$0xff]  ;;  %595 = vst [vmem:[#allocation5 + $0x1e0] sm:$0xff] %v83_v60  ;;  %596 = vst [vmem:[#allocation5 + $0x1e8] sm:$0xff] %v84_v61  ;;  %v86_v63 = vld [vmem:[#allocation2 + $0x1f8] sm:$0xff] }
  0x2e   :  { %597 = vst [vmem:[#allocation5 + $0x1f0] sm:$0xff] %v85_v62  ;;  %v87_v0 = vld [vmem:[#allocation2 + $0x200] sm:$0xff]  ;;  %v88_v1 = vld [vmem:[#allocation2 + $0x208] sm:$0xff]  ;;  %598 = vst [vmem:[#allocation5 + $0x1f8] sm:$0xff] %v86_v63 }
  0x2f   :  { %599 = vst [vmem:[#allocation5 + $0x200] sm:$0xff] %v87_v0  ;;  %600 = vst [vmem:[#allocation5 + $0x208] sm:$0xff] %v88_v1  ;;  %v89_v2 = vld [vmem:[#allocation2 + $0x210] sm:$0xff]  ;;  %v90_v3 = vld [vmem:[#allocation2 + $0x218] sm:$0xff] }
  0x30   :  { %v91_v4 = vld [vmem:[#allocation2 + $0x220] sm:$0xff]  ;;  %601 = vst [vmem:[#allocation5 + $0x210] sm:$0xff] %v89_v2  ;;  %602 = vst [vmem:[#allocation5 + $0x218] sm:$0xff] %v90_v3  ;;  %v92_v5 = vld [vmem:[#allocation2 + $0x228] sm:$0xff] }
  0x31   :  { %603 = vst [vmem:[#allocation5 + $0x220] sm:$0xff] %v91_v4  ;;  %v93_v6 = vld [vmem:[#allocation2 + $0x230] sm:$0xff]  ;;  %v94_v7 = vld [vmem:[#allocation2 + $0x238] sm:$0xff]  ;;  %604 = vst [vmem:[#allocation5 + $0x228] sm:$0xff] %v92_v5 }
  0x32   :  { %605 = vst [vmem:[#allocation5 + $0x230] sm:$0xff] %v93_v6  ;;  %606 = vst [vmem:[#allocation5 + $0x238] sm:$0xff] %v94_v7  ;;  %v95_v8 = vld [vmem:[#allocation2 + $0x240] sm:$0xff]  ;;  %v96_v9 = vld [vmem:[#allocation2 + $0x248] sm:$0xff] }
  0x33   :  { %v97_v10 = vld [vmem:[#allocation2 + $0x250] sm:$0xff]  ;;  %607 = vst [vmem:[#allocation5 + $0x240] sm:$0xff] %v95_v8  ;;  %608 = vst [vmem:[#allocation5 + $0x248] sm:$0xff] %v96_v9  ;;  %v98_v11 = vld [vmem:[#allocation2 + $0x258] sm:$0xff] }
  0x34   :  { %609 = vst [vmem:[#allocation5 + $0x250] sm:$0xff] %v97_v10  ;;  %v99_v12 = vld [vmem:[#allocation2 + $0x260] sm:$0xff]  ;;  %v100_v13 = vld [vmem:[#allocation2 + $0x268] sm:$0xff]  ;;  %610 = vst [vmem:[#allocation5 + $0x258] sm:$0xff] %v98_v11 }
  0x35   :  { %611 = vst [vmem:[#allocation5 + $0x260] sm:$0xff] %v99_v12  ;;  %612 = vst [vmem:[#allocation5 + $0x268] sm:$0xff] %v100_v13  ;;  %v101_v14 = vld [vmem:[#allocation2 + $0x270] sm:$0xff]  ;;  %v102_v15 = vld [vmem:[#allocation2 + $0x278] sm:$0xff] }
  0x36   :  { %v103_v16 = vld [vmem:[#allocation2 + $0x280] sm:$0xff]  ;;  %613 = vst [vmem:[#allocation5 + $0x270] sm:$0xff] %v101_v14  ;;  %614 = vst [vmem:[#allocation5 + $0x278] sm:$0xff] %v102_v15  ;;  %v104_v17 = vld [vmem:[#allocation2 + $0x288] sm:$0xff] }
  0x37   :  { %615 = vst [vmem:[#allocation5 + $0x280] sm:$0xff] %v103_v16  ;;  %v105_v18 = vld [vmem:[#allocation2 + $0x290] sm:$0xff]  ;;  %v106_v19 = vld [vmem:[#allocation2 + $0x298] sm:$0xff]  ;;  %616 = vst [vmem:[#allocation5 + $0x288] sm:$0xff] %v104_v17 }
  0x38   :  { %617 = vst [vmem:[#allocation5 + $0x290] sm:$0xff] %v105_v18  ;;  %618 = vst [vmem:[#allocation5 + $0x298] sm:$0xff] %v106_v19  ;;  %v107_v20 = vld [vmem:[#allocation2 + $0x2a0] sm:$0xff]  ;;  %v108_v21 = vld [vmem:[#allocation2 + $0x2a8] sm:$0xff] }
  0x39   :  { %v109_v22 = vld [vmem:[#allocation2 + $0x2b0] sm:$0xff]  ;;  %619 = vst [vmem:[#allocation5 + $0x2a0] sm:$0xff] %v107_v20  ;;  %620 = vst [vmem:[#allocation5 + $0x2a8] sm:$0xff] %v108_v21  ;;  %v110_v23 = vld [vmem:[#allocation2 + $0x2b8] sm:$0xff] }
  0x3a   :  { %621 = vst [vmem:[#allocation5 + $0x2b0] sm:$0xff] %v109_v22  ;;  %v111_v24 = vld [vmem:[#allocation2 + $0x2c0] sm:$0xff]  ;;  %v112_v25 = vld [vmem:[#allocation2 + $0x2c8] sm:$0xff]  ;;  %622 = vst [vmem:[#allocation5 + $0x2b8] sm:$0xff] %v110_v23 }
  0x3b   :  { %623 = vst [vmem:[#allocation5 + $0x2c0] sm:$0xff] %v111_v24  ;;  %624 = vst [vmem:[#allocation5 + $0x2c8] sm:$0xff] %v112_v25  ;;  %v113_v26 = vld [vmem:[#allocation2 + $0x2d0] sm:$0xff]  ;;  %v114_v27 = vld [vmem:[#allocation2 + $0x2d8] sm:$0xff] }
  0x3c   :  { %v115_v28 = vld [vmem:[#allocation2 + $0x2e0] sm:$0xff]  ;;  %625 = vst [vmem:[#allocation5 + $0x2d0] sm:$0xff] %v113_v26  ;;  %626 = vst [vmem:[#allocation5 + $0x2d8] sm:$0xff] %v114_v27  ;;  %v116_v29 = vld [vmem:[#allocation2 + $0x2e8] sm:$0xff] }
  0x3d   :  { %627 = vst [vmem:[#allocation5 + $0x2e0] sm:$0xff] %v115_v28  ;;  %v117_v30 = vld [vmem:[#allocation2 + $0x2f0] sm:$0xff]  ;;  %v118_v31 = vld [vmem:[#allocation2 + $0x2f8] sm:$0xff]  ;;  %628 = vst [vmem:[#allocation5 + $0x2e8] sm:$0xff] %v116_v29 }
  0x3e   :  { %629 = vst [vmem:[#allocation5 + $0x2f0] sm:$0xff] %v117_v30  ;;  %630 = vst [vmem:[#allocation5 + $0x2f8] sm:$0xff] %v118_v31  ;;  %v119_v32 = vld [vmem:[#allocation2 + $0x300] sm:$0xff]  ;;  %v120_v33 = vld [vmem:[#allocation2 + $0x308] sm:$0xff] }
  0x3f   :  { %v121_v34 = vld [vmem:[#allocation2 + $0x310] sm:$0xff]  ;;  %631 = vst [vmem:[#allocation5 + $0x300] sm:$0xff] %v119_v32  ;;  %632 = vst [vmem:[#allocation5 + $0x308] sm:$0xff] %v120_v33  ;;  %v122_v35 = vld [vmem:[#allocation2 + $0x318] sm:$0xff] }
  0x40   :  { %633 = vst [vmem:[#allocation5 + $0x310] sm:$0xff] %v121_v34  ;;  %v123_v36 = vld [vmem:[#allocation2 + $0x320] sm:$0xff]  ;;  %v124_v37 = vld [vmem:[#allocation2 + $0x328] sm:$0xff]  ;;  %634 = vst [vmem:[#allocation5 + $0x318] sm:$0xff] %v122_v35 }
  0x41   :  { %635 = vst [vmem:[#allocation5 + $0x320] sm:$0xff] %v123_v36  ;;  %636 = vst [vmem:[#allocation5 + $0x328] sm:$0xff] %v124_v37  ;;  %v125_v38 = vld [vmem:[#allocation2 + $0x330] sm:$0xff]  ;;  %v126_v39 = vld [vmem:[#allocation2 + $0x338] sm:$0xff] }
  0x42   :  { %v127_v40 = vld [vmem:[#allocation2 + $0x340] sm:$0xff]  ;;  %637 = vst [vmem:[#allocation5 + $0x330] sm:$0xff] %v125_v38  ;;  %638 = vst [vmem:[#allocation5 + $0x338] sm:$0xff] %v126_v39  ;;  %v128_v41 = vld [vmem:[#allocation2 + $0x348] sm:$0xff] }
  0x43   :  { %639 = vst [vmem:[#allocation5 + $0x340] sm:$0xff] %v127_v40  ;;  %v129_v42 = vld [vmem:[#allocation2 + $0x350] sm:$0xff]  ;;  %v130_v43 = vld [vmem:[#allocation2 + $0x358] sm:$0xff]  ;;  %640 = vst [vmem:[#allocation5 + $0x348] sm:$0xff] %v128_v41 }
  0x44   :  { %641 = vst [vmem:[#allocation5 + $0x350] sm:$0xff] %v129_v42  ;;  %642 = vst [vmem:[#allocation5 + $0x358] sm:$0xff] %v130_v43  ;;  %v131_v44 = vld [vmem:[#allocation2 + $0x360] sm:$0xff]  ;;  %v132_v45 = vld [vmem:[#allocation2 + $0x368] sm:$0xff] }
  0x45   :  { %v133_v46 = vld [vmem:[#allocation2 + $0x370] sm:$0xff]  ;;  %643 = vst [vmem:[#allocation5 + $0x360] sm:$0xff] %v131_v44  ;;  %644 = vst [vmem:[#allocation5 + $0x368] sm:$0xff] %v132_v45  ;;  %v134_v47 = vld [vmem:[#allocation2 + $0x378] sm:$0xff] }
  0x46   :  { %645 = vst [vmem:[#allocation5 + $0x370] sm:$0xff] %v133_v46  ;;  %v135_v48 = vld [vmem:[#allocation2 + $0x380] sm:$0xff]  ;;  %v136_v49 = vld [vmem:[#allocation2 + $0x388] sm:$0xff]  ;;  %646 = vst [vmem:[#allocation5 + $0x378] sm:$0xff] %v134_v47 }
  0x47   :  { %647 = vst [vmem:[#allocation5 + $0x380] sm:$0xff] %v135_v48  ;;  %648 = vst [vmem:[#allocation5 + $0x388] sm:$0xff] %v136_v49  ;;  %v137_v50 = vld [vmem:[#allocation2 + $0x390] sm:$0xff]  ;;  %v138_v51 = vld [vmem:[#allocation2 + $0x398] sm:$0xff] }
  0x48   :  { %v139_v52 = vld [vmem:[#allocation2 + $0x3a0] sm:$0xff]  ;;  %649 = vst [vmem:[#allocation5 + $0x390] sm:$0xff] %v137_v50  ;;  %650 = vst [vmem:[#allocation5 + $0x398] sm:$0xff] %v138_v51  ;;  %v140_v53 = vld [vmem:[#allocation2 + $0x3a8] sm:$0xff] }
  0x49   :  { %651 = vst [vmem:[#allocation5 + $0x3a0] sm:$0xff] %v139_v52  ;;  %v141_v54 = vld [vmem:[#allocation2 + $0x3b0] sm:$0xff]  ;;  %v142_v55 = vld [vmem:[#allocation2 + $0x3b8] sm:$0xff]  ;;  %652 = vst [vmem:[#allocation5 + $0x3a8] sm:$0xff] %v140_v53 }
  0x4a   :  { %653 = vst [vmem:[#allocation5 + $0x3b0] sm:$0xff] %v141_v54  ;;  %654 = vst [vmem:[#allocation5 + $0x3b8] sm:$0xff] %v142_v55  ;;  %v143_v56 = vld [vmem:[#allocation2 + $0x3c0] sm:$0xff]  ;;  %v144_v57 = vld [vmem:[#allocation2 + $0x3c8] sm:$0xff] }
  0x4b   :  { %v145_v58 = vld [vmem:[#allocation2 + $0x3d0] sm:$0xff]  ;;  %655 = vst [vmem:[#allocation5 + $0x3c0] sm:$0xff] %v143_v56  ;;  %656 = vst [vmem:[#allocation5 + $0x3c8] sm:$0xff] %v144_v57  ;;  %v146_v59 = vld [vmem:[#allocation2 + $0x3d8] sm:$0xff] }
  0x4c   :  { %657 = vst [vmem:[#allocation5 + $0x3d0] sm:$0xff] %v145_v58  ;;  %v147_v60 = vld [vmem:[#allocation2 + $0x3e0] sm:$0xff]  ;;  %v148_v61 = vld [vmem:[#allocation2 + $0x3e8] sm:$0xff]  ;;  %658 = vst [vmem:[#allocation5 + $0x3d8] sm:$0xff] %v146_v59 }
  0x4d   :  { %659 = vst [vmem:[#allocation5 + $0x3e0] sm:$0xff] %v147_v60  ;;  %660 = vst [vmem:[#allocation5 + $0x3e8] sm:$0xff] %v148_v61  ;;  %v149_v62 = vld [vmem:[#allocation2 + $0x3f0] sm:$0xff]  ;;  %v150_v63 = vld [vmem:[#allocation2 + $0x3f8] sm:$0xff] }
  0x4e   :  { %v151_v0 = vld [vmem:[#allocation2 + $0x400] sm:$0xff]  ;;  %661 = vst [vmem:[#allocation5 + $0x3f0] sm:$0xff] %v149_v62  ;;  %662 = vst [vmem:[#allocation5 + $0x3f8] sm:$0xff] %v150_v63  ;;  %v152_v1 = vld [vmem:[#allocation2 + $0x408] sm:$0xff] }
  0x4f   :  { %663 = vst [vmem:[#allocation5 + $0x400] sm:$0xff] %v151_v0  ;;  %v153_v2 = vld [vmem:[#allocation2 + $0x410] sm:$0xff]  ;;  %v154_v3 = vld [vmem:[#allocation2 + $0x418] sm:$0xff]  ;;  %664 = vst [vmem:[#allocation5 + $0x408] sm:$0xff] %v152_v1 }
  0x50   :  { %665 = vst [vmem:[#allocation5 + $0x410] sm:$0xff] %v153_v2  ;;  %666 = vst [vmem:[#allocation5 + $0x418] sm:$0xff] %v154_v3  ;;  %v155_v4 = vld [vmem:[#allocation2 + $0x420] sm:$0xff]  ;;  %v156_v5 = vld [vmem:[#allocation2 + $0x428] sm:$0xff] }
  0x51   :  { %v157_v6 = vld [vmem:[#allocation2 + $0x430] sm:$0xff]  ;;  %667 = vst [vmem:[#allocation5 + $0x420] sm:$0xff] %v155_v4  ;;  %668 = vst [vmem:[#allocation5 + $0x428] sm:$0xff] %v156_v5  ;;  %v158_v7 = vld [vmem:[#allocation2 + $0x438] sm:$0xff] }
  0x52   :  { %669 = vst [vmem:[#allocation5 + $0x430] sm:$0xff] %v157_v6  ;;  %v159_v8 = vld [vmem:[#allocation2 + $0x440] sm:$0xff]  ;;  %v160_v9 = vld [vmem:[#allocation2 + $0x448] sm:$0xff]  ;;  %670 = vst [vmem:[#allocation5 + $0x438] sm:$0xff] %v158_v7 }
  0x53   :  { %671 = vst [vmem:[#allocation5 + $0x440] sm:$0xff] %v159_v8  ;;  %672 = vst [vmem:[#allocation5 + $0x448] sm:$0xff] %v160_v9  ;;  %v161_v10 = vld [vmem:[#allocation2 + $0x450] sm:$0xff]  ;;  %v162_v11 = vld [vmem:[#allocation2 + $0x458] sm:$0xff] }
  0x54   :  { %v163_v12 = vld [vmem:[#allocation2 + $0x460] sm:$0xff]  ;;  %673 = vst [vmem:[#allocation5 + $0x450] sm:$0xff] %v161_v10  ;;  %674 = vst [vmem:[#allocation5 + $0x458] sm:$0xff] %v162_v11  ;;  %v164_v13 = vld [vmem:[#allocation2 + $0x468] sm:$0xff] }
  0x55   :  { %675 = vst [vmem:[#allocation5 + $0x460] sm:$0xff] %v163_v12  ;;  %v165_v14 = vld [vmem:[#allocation2 + $0x470] sm:$0xff]  ;;  %v166_v15 = vld [vmem:[#allocation2 + $0x478] sm:$0xff]  ;;  %676 = vst [vmem:[#allocation5 + $0x468] sm:$0xff] %v164_v13 }
  0x56   :  { %677 = vst [vmem:[#allocation5 + $0x470] sm:$0xff] %v165_v14  ;;  %678 = vst [vmem:[#allocation5 + $0x478] sm:$0xff] %v166_v15  ;;  %v167_v16 = vld [vmem:[#allocation2 + $0x480] sm:$0xff]  ;;  %v168_v17 = vld [vmem:[#allocation2 + $0x488] sm:$0xff] }
  0x57   :  { %v169_v18 = vld [vmem:[#allocation2 + $0x490] sm:$0xff]  ;;  %679 = vst [vmem:[#allocation5 + $0x480] sm:$0xff] %v167_v16  ;;  %680 = vst [vmem:[#allocation5 + $0x488] sm:$0xff] %v168_v17  ;;  %v170_v19 = vld [vmem:[#allocation2 + $0x498] sm:$0xff] }
  0x58   :  { %681 = vst [vmem:[#allocation5 + $0x490] sm:$0xff] %v169_v18  ;;  %v171_v20 = vld [vmem:[#allocation2 + $0x4a0] sm:$0xff]  ;;  %v172_v21 = vld [vmem:[#allocation2 + $0x4a8] sm:$0xff]  ;;  %682 = vst [vmem:[#allocation5 + $0x498] sm:$0xff] %v170_v19 }
  0x59   :  { %683 = vst [vmem:[#allocation5 + $0x4a0] sm:$0xff] %v171_v20  ;;  %684 = vst [vmem:[#allocation5 + $0x4a8] sm:$0xff] %v172_v21  ;;  %v173_v22 = vld [vmem:[#allocation2 + $0x4b0] sm:$0xff]  ;;  %v174_v23 = vld [vmem:[#allocation2 + $0x4b8] sm:$0xff] }
  0x5a   :  { %v175_v24 = vld [vmem:[#allocation2 + $0x4c0] sm:$0xff]  ;;  %685 = vst [vmem:[#allocation5 + $0x4b0] sm:$0xff] %v173_v22  ;;  %686 = vst [vmem:[#allocation5 + $0x4b8] sm:$0xff] %v174_v23  ;;  %v176_v25 = vld [vmem:[#allocation2 + $0x4c8] sm:$0xff] }
  0x5b   :  { %687 = vst [vmem:[#allocation5 + $0x4c0] sm:$0xff] %v175_v24  ;;  %v177_v26 = vld [vmem:[#allocation2 + $0x4d0] sm:$0xff]  ;;  %v178_v27 = vld [vmem:[#allocation2 + $0x4d8] sm:$0xff]  ;;  %688 = vst [vmem:[#allocation5 + $0x4c8] sm:$0xff] %v176_v25 }
  0x5c   :  { %689 = vst [vmem:[#allocation5 + $0x4d0] sm:$0xff] %v177_v26  ;;  %690 = vst [vmem:[#allocation5 + $0x4d8] sm:$0xff] %v178_v27  ;;  %v179_v28 = vld [vmem:[#allocation2 + $0x4e0] sm:$0xff]  ;;  %v180_v29 = vld [vmem:[#allocation2 + $0x4e8] sm:$0xff] }
  0x5d   :  { %v181_v30 = vld [vmem:[#allocation2 + $0x4f0] sm:$0xff]  ;;  %691 = vst [vmem:[#allocation5 + $0x4e0] sm:$0xff] %v179_v28  ;;  %692 = vst [vmem:[#allocation5 + $0x4e8] sm:$0xff] %v180_v29  ;;  %v182_v31 = vld [vmem:[#allocation2 + $0x4f8] sm:$0xff] }
  0x5e   :  { %693 = vst [vmem:[#allocation5 + $0x4f0] sm:$0xff] %v181_v30  ;;  %v183_v32 = vld [vmem:[#allocation2 + $0x500] sm:$0xff]  ;;  %v184_v33 = vld [vmem:[#allocation2 + $0x508] sm:$0xff]  ;;  %694 = vst [vmem:[#allocation5 + $0x4f8] sm:$0xff] %v182_v31 }
  0x5f   :  { %695 = vst [vmem:[#allocation5 + $0x500] sm:$0xff] %v183_v32  ;;  %696 = vst [vmem:[#allocation5 + $0x508] sm:$0xff] %v184_v33  ;;  %v185_v34 = vld [vmem:[#allocation2 + $0x510] sm:$0xff]  ;;  %v186_v35 = vld [vmem:[#allocation2 + $0x518] sm:$0xff] }
  0x60   :  { %v187_v36 = vld [vmem:[#allocation2 + $0x520] sm:$0xff]  ;;  %697 = vst [vmem:[#allocation5 + $0x510] sm:$0xff] %v185_v34  ;;  %698 = vst [vmem:[#allocation5 + $0x518] sm:$0xff] %v186_v35  ;;  %v188_v37 = vld [vmem:[#allocation2 + $0x528] sm:$0xff] }
  0x61   :  { %699 = vst [vmem:[#allocation5 + $0x520] sm:$0xff] %v187_v36  ;;  %v189_v38 = vld [vmem:[#allocation2 + $0x530] sm:$0xff]  ;;  %v190_v39 = vld [vmem:[#allocation2 + $0x538] sm:$0xff]  ;;  %700 = vst [vmem:[#allocation5 + $0x528] sm:$0xff] %v188_v37 }
  0x62   :  { %701 = vst [vmem:[#allocation5 + $0x530] sm:$0xff] %v189_v38  ;;  %702 = vst [vmem:[#allocation5 + $0x538] sm:$0xff] %v190_v39  ;;  %v191_v40 = vld [vmem:[#allocation2 + $0x540] sm:$0xff]  ;;  %v192_v41 = vld [vmem:[#allocation2 + $0x548] sm:$0xff] }
  0x63   :  { %v193_v42 = vld [vmem:[#allocation2 + $0x550] sm:$0xff]  ;;  %703 = vst [vmem:[#allocation5 + $0x540] sm:$0xff] %v191_v40  ;;  %704 = vst [vmem:[#allocation5 + $0x548] sm:$0xff] %v192_v41  ;;  %v194_v43 = vld [vmem:[#allocation2 + $0x558] sm:$0xff] }
  0x64   :  { %705 = vst [vmem:[#allocation5 + $0x550] sm:$0xff] %v193_v42  ;;  %v195_v44 = vld [vmem:[#allocation2 + $0x560] sm:$0xff]  ;;  %v196_v45 = vld [vmem:[#allocation2 + $0x568] sm:$0xff]  ;;  %706 = vst [vmem:[#allocation5 + $0x558] sm:$0xff] %v194_v43 }
  0x65   :  { %707 = vst [vmem:[#allocation5 + $0x560] sm:$0xff] %v195_v44  ;;  %708 = vst [vmem:[#allocation5 + $0x568] sm:$0xff] %v196_v45  ;;  %v197_v46 = vld [vmem:[#allocation2 + $0x570] sm:$0xff]  ;;  %v198_v47 = vld [vmem:[#allocation2 + $0x578] sm:$0xff] }
  0x66   :  { %v199_v48 = vld [vmem:[#allocation2 + $0x580] sm:$0xff]  ;;  %709 = vst [vmem:[#allocation5 + $0x570] sm:$0xff] %v197_v46  ;;  %710 = vst [vmem:[#allocation5 + $0x578] sm:$0xff] %v198_v47  ;;  %v200_v49 = vld [vmem:[#allocation2 + $0x588] sm:$0xff] }
  0x67   :  { %711 = vst [vmem:[#allocation5 + $0x580] sm:$0xff] %v199_v48  ;;  %v201_v50 = vld [vmem:[#allocation2 + $0x590] sm:$0xff]  ;;  %v202_v51 = vld [vmem:[#allocation2 + $0x598] sm:$0xff]  ;;  %712 = vst [vmem:[#allocation5 + $0x588] sm:$0xff] %v200_v49 }
  0x68   :  { %713 = vst [vmem:[#allocation5 + $0x590] sm:$0xff] %v201_v50  ;;  %714 = vst [vmem:[#allocation5 + $0x598] sm:$0xff] %v202_v51  ;;  %v203_v52 = vld [vmem:[#allocation2 + $0x5a0] sm:$0xff]  ;;  %v204_v53 = vld [vmem:[#allocation2 + $0x5a8] sm:$0xff] }
  0x69   :  { %v205_v54 = vld [vmem:[#allocation2 + $0x5b0] sm:$0xff]  ;;  %715 = vst [vmem:[#allocation5 + $0x5a0] sm:$0xff] %v203_v52  ;;  %716 = vst [vmem:[#allocation5 + $0x5a8] sm:$0xff] %v204_v53  ;;  %v206_v55 = vld [vmem:[#allocation2 + $0x5b8] sm:$0xff] }
  0x6a   :  { %717 = vst [vmem:[#allocation5 + $0x5b0] sm:$0xff] %v205_v54  ;;  %v207_v56 = vld [vmem:[#allocation2 + $0x5c0] sm:$0xff]  ;;  %v208_v57 = vld [vmem:[#allocation2 + $0x5c8] sm:$0xff]  ;;  %718 = vst [vmem:[#allocation5 + $0x5b8] sm:$0xff] %v206_v55 }
  0x6b   :  { %719 = vst [vmem:[#allocation5 + $0x5c0] sm:$0xff] %v207_v56  ;;  %720 = vst [vmem:[#allocation5 + $0x5c8] sm:$0xff] %v208_v57  ;;  %v209_v58 = vld [vmem:[#allocation2 + $0x5d0] sm:$0xff]  ;;  %v210_v59 = vld [vmem:[#allocation2 + $0x5d8] sm:$0xff] }
  0x6c   :  { %v211_v60 = vld [vmem:[#allocation2 + $0x5e0] sm:$0xff]  ;;  %721 = vst [vmem:[#allocation5 + $0x5d0] sm:$0xff] %v209_v58  ;;  %722 = vst [vmem:[#allocation5 + $0x5d8] sm:$0xff] %v210_v59  ;;  %v212_v61 = vld [vmem:[#allocation2 + $0x5e8] sm:$0xff] }
  0x6d   :  { %723 = vst [vmem:[#allocation5 + $0x5e0] sm:$0xff] %v211_v60  ;;  %v213_v62 = vld [vmem:[#allocation2 + $0x5f0] sm:$0xff]  ;;  %v214_v63 = vld [vmem:[#allocation2 + $0x5f8] sm:$0xff]  ;;  %724 = vst [vmem:[#allocation5 + $0x5e8] sm:$0xff] %v212_v61 }
  0x6e   :  { %725 = vst [vmem:[#allocation5 + $0x5f0] sm:$0xff] %v213_v62  ;;  %726 = vst [vmem:[#allocation5 + $0x5f8] sm:$0xff] %v214_v63  ;;  %v215_v0 = vld [vmem:[#allocation2 + $0x600] sm:$0xff]  ;;  %v216_v1 = vld [vmem:[#allocation2 + $0x608] sm:$0xff] }
  0x6f   :  { %v217_v2 = vld [vmem:[#allocation2 + $0x610] sm:$0xff]  ;;  %727 = vst [vmem:[#allocation5 + $0x600] sm:$0xff] %v215_v0  ;;  %728 = vst [vmem:[#allocation5 + $0x608] sm:$0xff] %v216_v1  ;;  %v218_v3 = vld [vmem:[#allocation2 + $0x618] sm:$0xff] }
  0x70   :  { %729 = vst [vmem:[#allocation5 + $0x610] sm:$0xff] %v217_v2  ;;  %v219_v4 = vld [vmem:[#allocation2 + $0x620] sm:$0xff]  ;;  %v220_v5 = vld [vmem:[#allocation2 + $0x628] sm:$0xff]  ;;  %730 = vst [vmem:[#allocation5 + $0x618] sm:$0xff] %v218_v3 }
  0x71   :  { %731 = vst [vmem:[#allocation5 + $0x620] sm:$0xff] %v219_v4  ;;  %732 = vst [vmem:[#allocation5 + $0x628] sm:$0xff] %v220_v5  ;;  %v221_v6 = vld [vmem:[#allocation2 + $0x630] sm:$0xff]  ;;  %v222_v7 = vld [vmem:[#allocation2 + $0x638] sm:$0xff] }
  0x72   :  { %v223_v8 = vld [vmem:[#allocation2 + $0x640] sm:$0xff]  ;;  %733 = vst [vmem:[#allocation5 + $0x630] sm:$0xff] %v221_v6  ;;  %734 = vst [vmem:[#allocation5 + $0x638] sm:$0xff] %v222_v7  ;;  %v224_v9 = vld [vmem:[#allocation2 + $0x648] sm:$0xff] }
  0x73   :  { %735 = vst [vmem:[#allocation5 + $0x640] sm:$0xff] %v223_v8  ;;  %v225_v10 = vld [vmem:[#allocation2 + $0x650] sm:$0xff]  ;;  %v226_v11 = vld [vmem:[#allocation2 + $0x658] sm:$0xff]  ;;  %736 = vst [vmem:[#allocation5 + $0x648] sm:$0xff] %v224_v9 }
  0x74   :  { %737 = vst [vmem:[#allocation5 + $0x650] sm:$0xff] %v225_v10  ;;  %738 = vst [vmem:[#allocation5 + $0x658] sm:$0xff] %v226_v11  ;;  %v227_v12 = vld [vmem:[#allocation2 + $0x660] sm:$0xff]  ;;  %v228_v13 = vld [vmem:[#allocation2 + $0x668] sm:$0xff] }
  0x75   :  { %v229_v14 = vld [vmem:[#allocation2 + $0x670] sm:$0xff]  ;;  %739 = vst [vmem:[#allocation5 + $0x660] sm:$0xff] %v227_v12  ;;  %740 = vst [vmem:[#allocation5 + $0x668] sm:$0xff] %v228_v13  ;;  %v230_v15 = vld [vmem:[#allocation2 + $0x678] sm:$0xff] }
  0x76   :  { %741 = vst [vmem:[#allocation5 + $0x670] sm:$0xff] %v229_v14  ;;  %v231_v16 = vld [vmem:[#allocation2 + $0x680] sm:$0xff]  ;;  %v232_v17 = vld [vmem:[#allocation2 + $0x688] sm:$0xff]  ;;  %742 = vst [vmem:[#allocation5 + $0x678] sm:$0xff] %v230_v15 }
  0x77   :  { %743 = vst [vmem:[#allocation5 + $0x680] sm:$0xff] %v231_v16  ;;  %744 = vst [vmem:[#allocation5 + $0x688] sm:$0xff] %v232_v17  ;;  %v233_v18 = vld [vmem:[#allocation2 + $0x690] sm:$0xff]  ;;  %v234_v19 = vld [vmem:[#allocation2 + $0x698] sm:$0xff] }
  0x78   :  { %v235_v20 = vld [vmem:[#allocation2 + $0x6a0] sm:$0xff]  ;;  %745 = vst [vmem:[#allocation5 + $0x690] sm:$0xff] %v233_v18  ;;  %746 = vst [vmem:[#allocation5 + $0x698] sm:$0xff] %v234_v19  ;;  %v236_v21 = vld [vmem:[#allocation2 + $0x6a8] sm:$0xff] }
  0x79   :  { %747 = vst [vmem:[#allocation5 + $0x6a0] sm:$0xff] %v235_v20  ;;  %v237_v22 = vld [vmem:[#allocation2 + $0x6b0] sm:$0xff]  ;;  %v238_v23 = vld [vmem:[#allocation2 + $0x6b8] sm:$0xff]  ;;  %748 = vst [vmem:[#allocation5 + $0x6a8] sm:$0xff] %v236_v21 }
  0x7a   :  { %749 = vst [vmem:[#allocation5 + $0x6b0] sm:$0xff] %v237_v22  ;;  %750 = vst [vmem:[#allocation5 + $0x6b8] sm:$0xff] %v238_v23  ;;  %v239_v24 = vld [vmem:[#allocation2 + $0x6c0] sm:$0xff]  ;;  %v240_v25 = vld [vmem:[#allocation2 + $0x6c8] sm:$0xff] }
  0x7b   :  { %v241_v26 = vld [vmem:[#allocation2 + $0x6d0] sm:$0xff]  ;;  %751 = vst [vmem:[#allocation5 + $0x6c0] sm:$0xff] %v239_v24  ;;  %752 = vst [vmem:[#allocation5 + $0x6c8] sm:$0xff] %v240_v25  ;;  %v242_v27 = vld [vmem:[#allocation2 + $0x6d8] sm:$0xff] }
  0x7c   :  { %753 = vst [vmem:[#allocation5 + $0x6d0] sm:$0xff] %v241_v26  ;;  %v243_v28 = vld [vmem:[#allocation2 + $0x6e0] sm:$0xff]  ;;  %v244_v29 = vld [vmem:[#allocation2 + $0x6e8] sm:$0xff]  ;;  %754 = vst [vmem:[#allocation5 + $0x6d8] sm:$0xff] %v242_v27 }
  0x7d   :  { %755 = vst [vmem:[#allocation5 + $0x6e0] sm:$0xff] %v243_v28  ;;  %756 = vst [vmem:[#allocation5 + $0x6e8] sm:$0xff] %v244_v29  ;;  %v245_v30 = vld [vmem:[#allocation2 + $0x6f0] sm:$0xff]  ;;  %v246_v31 = vld [vmem:[#allocation2 + $0x6f8] sm:$0xff] }
  0x7e   :  { %v247_v32 = vld [vmem:[#allocation2 + $0x700] sm:$0xff]  ;;  %757 = vst [vmem:[#allocation5 + $0x6f0] sm:$0xff] %v245_v30  ;;  %758 = vst [vmem:[#allocation5 + $0x6f8] sm:$0xff] %v246_v31  ;;  %v248_v33 = vld [vmem:[#allocation2 + $0x708] sm:$0xff] }
  0x7f   :  { %759 = vst [vmem:[#allocation5 + $0x700] sm:$0xff] %v247_v32  ;;  %v249_v34 = vld [vmem:[#allocation2 + $0x710] sm:$0xff]  ;;  %v250_v35 = vld [vmem:[#allocation2 + $0x718] sm:$0xff]  ;;  %760 = vst [vmem:[#allocation5 + $0x708] sm:$0xff] %v248_v33 }
  0x80   :  { %761 = vst [vmem:[#allocation5 + $0x710] sm:$0xff] %v249_v34  ;;  %762 = vst [vmem:[#allocation5 + $0x718] sm:$0xff] %v250_v35  ;;  %v251_v36 = vld [vmem:[#allocation2 + $0x720] sm:$0xff]  ;;  %v252_v37 = vld [vmem:[#allocation2 + $0x728] sm:$0xff] }
  0x81   :  { %v253_v38 = vld [vmem:[#allocation2 + $0x730] sm:$0xff]  ;;  %763 = vst [vmem:[#allocation5 + $0x720] sm:$0xff] %v251_v36  ;;  %764 = vst [vmem:[#allocation5 + $0x728] sm:$0xff] %v252_v37  ;;  %v254_v39 = vld [vmem:[#allocation2 + $0x738] sm:$0xff] }
  0x82   :  { %765 = vst [vmem:[#allocation5 + $0x730] sm:$0xff] %v253_v38  ;;  %v255_v40 = vld [vmem:[#allocation2 + $0x740] sm:$0xff]  ;;  %v256_v41 = vld [vmem:[#allocation2 + $0x748] sm:$0xff]  ;;  %766 = vst [vmem:[#allocation5 + $0x738] sm:$0xff] %v254_v39 }
  0x83   :  { %767 = vst [vmem:[#allocation5 + $0x740] sm:$0xff] %v255_v40  ;;  %768 = vst [vmem:[#allocation5 + $0x748] sm:$0xff] %v256_v41  ;;  %v257_v42 = vld [vmem:[#allocation2 + $0x750] sm:$0xff]  ;;  %v258_v43 = vld [vmem:[#allocation2 + $0x758] sm:$0xff] }
  0x84   :  { %v259_v44 = vld [vmem:[#allocation2 + $0x760] sm:$0xff]  ;;  %769 = vst [vmem:[#allocation5 + $0x750] sm:$0xff] %v257_v42  ;;  %770 = vst [vmem:[#allocation5 + $0x758] sm:$0xff] %v258_v43  ;;  %v260_v45 = vld [vmem:[#allocation2 + $0x768] sm:$0xff] }
  0x85   :  { %771 = vst [vmem:[#allocation5 + $0x760] sm:$0xff] %v259_v44  ;;  %v261_v46 = vld [vmem:[#allocation2 + $0x770] sm:$0xff]  ;;  %v262_v47 = vld [vmem:[#allocation2 + $0x778] sm:$0xff]  ;;  %772 = vst [vmem:[#allocation5 + $0x768] sm:$0xff] %v260_v45 }
  0x86   :  { %773 = vst [vmem:[#allocation5 + $0x770] sm:$0xff] %v261_v46  ;;  %774 = vst [vmem:[#allocation5 + $0x778] sm:$0xff] %v262_v47  ;;  %v263_v48 = vld [vmem:[#allocation2 + $0x780] sm:$0xff]  ;;  %v264_v49 = vld [vmem:[#allocation2 + $0x788] sm:$0xff] }
  0x87   :  { %v265_v50 = vld [vmem:[#allocation2 + $0x790] sm:$0xff]  ;;  %775 = vst [vmem:[#allocation5 + $0x780] sm:$0xff] %v263_v48  ;;  %776 = vst [vmem:[#allocation5 + $0x788] sm:$0xff] %v264_v49  ;;  %v266_v51 = vld [vmem:[#allocation2 + $0x798] sm:$0xff] }
  0x88   :  { %777 = vst [vmem:[#allocation5 + $0x790] sm:$0xff] %v265_v50  ;;  %v267_v52 = vld [vmem:[#allocation2 + $0x7a0] sm:$0xff]  ;;  %v268_v53 = vld [vmem:[#allocation2 + $0x7a8] sm:$0xff]  ;;  %778 = vst [vmem:[#allocation5 + $0x798] sm:$0xff] %v266_v51 }
  0x89   :  { %779 = vst [vmem:[#allocation5 + $0x7a0] sm:$0xff] %v267_v52  ;;  %780 = vst [vmem:[#allocation5 + $0x7a8] sm:$0xff] %v268_v53  ;;  %v269_v54 = vld [vmem:[#allocation2 + $0x7b0] sm:$0xff]  ;;  %v270_v55 = vld [vmem:[#allocation2 + $0x7b8] sm:$0xff] }
  0x8a   :  { %v271_v56 = vld [vmem:[#allocation2 + $0x7c0] sm:$0xff]  ;;  %781 = vst [vmem:[#allocation5 + $0x7b0] sm:$0xff] %v269_v54  ;;  %782 = vst [vmem:[#allocation5 + $0x7b8] sm:$0xff] %v270_v55  ;;  %v272_v57 = vld [vmem:[#allocation2 + $0x7c8] sm:$0xff] }
  0x8b   :  { %783 = vst [vmem:[#allocation5 + $0x7c0] sm:$0xff] %v271_v56  ;;  %v273_v58 = vld [vmem:[#allocation2 + $0x7d0] sm:$0xff]  ;;  %v274_v59 = vld [vmem:[#allocation2 + $0x7d8] sm:$0xff]  ;;  %784 = vst [vmem:[#allocation5 + $0x7c8] sm:$0xff] %v272_v57 }
  0x8c   :  { %785 = vst [vmem:[#allocation5 + $0x7d0] sm:$0xff] %v273_v58  ;;  %786 = vst [vmem:[#allocation5 + $0x7d8] sm:$0xff] %v274_v59  ;;  %v275_v60 = vld [vmem:[#allocation2 + $0x7e0] sm:$0xff]  ;;  %v276_v61 = vld [vmem:[#allocation2 + $0x7e8] sm:$0xff] }
  0x8d   :  { %v277_v62 = vld [vmem:[#allocation2 + $0x7f0] sm:$0xff]  ;;  %787 = vst [vmem:[#allocation5 + $0x7e0] sm:$0xff] %v275_v60  ;;  %788 = vst [vmem:[#allocation5 + $0x7e8] sm:$0xff] %v276_v61  ;;  %v278_v63 = vld [vmem:[#allocation2 + $0x7f8] sm:$0xff] }
  0x8e   :  { %789 = vst [vmem:[#allocation5 + $0x7f0] sm:$0xff] %v277_v62  ;;  %v279_v0 = vld [vmem:[#allocation2 + $0x800] sm:$0xff]  ;;  %v280_v1 = vld [vmem:[#allocation2 + $0x808] sm:$0xff]  ;;  %790 = vst [vmem:[#allocation5 + $0x7f8] sm:$0xff] %v278_v63 }
  0x8f   :  { %791 = vst [vmem:[#allocation5 + $0x800] sm:$0xff] %v279_v0  ;;  %792 = vst [vmem:[#allocation5 + $0x808] sm:$0xff] %v280_v1  ;;  %v281_v2 = vld [vmem:[#allocation2 + $0x810] sm:$0xff]  ;;  %v282_v3 = vld [vmem:[#allocation2 + $0x818] sm:$0xff] }
  0x90   :  { %v283_v4 = vld [vmem:[#allocation2 + $0x820] sm:$0xff]  ;;  %793 = vst [vmem:[#allocation5 + $0x810] sm:$0xff] %v281_v2  ;;  %794 = vst [vmem:[#allocation5 + $0x818] sm:$0xff] %v282_v3  ;;  %v284_v5 = vld [vmem:[#allocation2 + $0x828] sm:$0xff] }
  0x91   :  { %795 = vst [vmem:[#allocation5 + $0x820] sm:$0xff] %v283_v4  ;;  %v285_v6 = vld [vmem:[#allocation2 + $0x830] sm:$0xff]  ;;  %v286_v7 = vld [vmem:[#allocation2 + $0x838] sm:$0xff]  ;;  %796 = vst [vmem:[#allocation5 + $0x828] sm:$0xff] %v284_v5 }
  0x92   :  { %797 = vst [vmem:[#allocation5 + $0x830] sm:$0xff] %v285_v6  ;;  %798 = vst [vmem:[#allocation5 + $0x838] sm:$0xff] %v286_v7  ;;  %v287_v8 = vld [vmem:[#allocation2 + $0x840] sm:$0xff]  ;;  %v288_v9 = vld [vmem:[#allocation2 + $0x848] sm:$0xff] }
  0x93   :  { %v289_v10 = vld [vmem:[#allocation2 + $0x850] sm:$0xff]  ;;  %799 = vst [vmem:[#allocation5 + $0x840] sm:$0xff] %v287_v8  ;;  %800 = vst [vmem:[#allocation5 + $0x848] sm:$0xff] %v288_v9  ;;  %v290_v11 = vld [vmem:[#allocation2 + $0x858] sm:$0xff] }
  0x94   :  { %801 = vst [vmem:[#allocation5 + $0x850] sm:$0xff] %v289_v10  ;;  %v291_v12 = vld [vmem:[#allocation2 + $0x860] sm:$0xff]  ;;  %v292_v13 = vld [vmem:[#allocation2 + $0x868] sm:$0xff]  ;;  %802 = vst [vmem:[#allocation5 + $0x858] sm:$0xff] %v290_v11 }
  0x95   :  { %803 = vst [vmem:[#allocation5 + $0x860] sm:$0xff] %v291_v12  ;;  %804 = vst [vmem:[#allocation5 + $0x868] sm:$0xff] %v292_v13  ;;  %v293_v14 = vld [vmem:[#allocation2 + $0x870] sm:$0xff]  ;;  %v294_v15 = vld [vmem:[#allocation2 + $0x878] sm:$0xff] }
  0x96   :  { %v295_v16 = vld [vmem:[#allocation2 + $0x880] sm:$0xff]  ;;  %805 = vst [vmem:[#allocation5 + $0x870] sm:$0xff] %v293_v14  ;;  %806 = vst [vmem:[#allocation5 + $0x878] sm:$0xff] %v294_v15  ;;  %v296_v17 = vld [vmem:[#allocation2 + $0x888] sm:$0xff] }
  0x97   :  { %807 = vst [vmem:[#allocation5 + $0x880] sm:$0xff] %v295_v16  ;;  %v297_v18 = vld [vmem:[#allocation2 + $0x890] sm:$0xff]  ;;  %v298_v19 = vld [vmem:[#allocation2 + $0x898] sm:$0xff]  ;;  %808 = vst [vmem:[#allocation5 + $0x888] sm:$0xff] %v296_v17 }
  0x98   :  { %809 = vst [vmem:[#allocation5 + $0x890] sm:$0xff] %v297_v18  ;;  %810 = vst [vmem:[#allocation5 + $0x898] sm:$0xff] %v298_v19  ;;  %v299_v20 = vld [vmem:[#allocation2 + $0x8a0] sm:$0xff]  ;;  %v300_v21 = vld [vmem:[#allocation2 + $0x8a8] sm:$0xff] }
  0x99   :  { %v301_v22 = vld [vmem:[#allocation2 + $0x8b0] sm:$0xff]  ;;  %811 = vst [vmem:[#allocation5 + $0x8a0] sm:$0xff] %v299_v20  ;;  %812 = vst [vmem:[#allocation5 + $0x8a8] sm:$0xff] %v300_v21  ;;  %v302_v23 = vld [vmem:[#allocation2 + $0x8b8] sm:$0xff] }
  0x9a   :  { %813 = vst [vmem:[#allocation5 + $0x8b0] sm:$0xff] %v301_v22  ;;  %v303_v24 = vld [vmem:[#allocation2 + $0x8c0] sm:$0xff]  ;;  %v304_v25 = vld [vmem:[#allocation2 + $0x8c8] sm:$0xff]  ;;  %814 = vst [vmem:[#allocation5 + $0x8b8] sm:$0xff] %v302_v23 }
  0x9b   :  { %815 = vst [vmem:[#allocation5 + $0x8c0] sm:$0xff] %v303_v24  ;;  %816 = vst [vmem:[#allocation5 + $0x8c8] sm:$0xff] %v304_v25  ;;  %v305_v26 = vld [vmem:[#allocation2 + $0x8d0] sm:$0xff]  ;;  %v306_v27 = vld [vmem:[#allocation2 + $0x8d8] sm:$0xff] }
  0x9c   :  { %v307_v28 = vld [vmem:[#allocation2 + $0x8e0] sm:$0xff]  ;;  %817 = vst [vmem:[#allocation5 + $0x8d0] sm:$0xff] %v305_v26  ;;  %818 = vst [vmem:[#allocation5 + $0x8d8] sm:$0xff] %v306_v27  ;;  %v308_v29 = vld [vmem:[#allocation2 + $0x8e8] sm:$0xff] }
  0x9d   :  { %819 = vst [vmem:[#allocation5 + $0x8e0] sm:$0xff] %v307_v28  ;;  %v309_v30 = vld [vmem:[#allocation2 + $0x8f0] sm:$0xff]  ;;  %v310_v31 = vld [vmem:[#allocation2 + $0x8f8] sm:$0xff]  ;;  %820 = vst [vmem:[#allocation5 + $0x8e8] sm:$0xff] %v308_v29 }
  0x9e   :  { %821 = vst [vmem:[#allocation5 + $0x8f0] sm:$0xff] %v309_v30  ;;  %822 = vst [vmem:[#allocation5 + $0x8f8] sm:$0xff] %v310_v31  ;;  %v311_v32 = vld [vmem:[#allocation2 + $0x900] sm:$0xff]  ;;  %v312_v33 = vld [vmem:[#allocation2 + $0x908] sm:$0xff] }
  0x9f   :  { %v313_v34 = vld [vmem:[#allocation2 + $0x910] sm:$0xff]  ;;  %823 = vst [vmem:[#allocation5 + $0x900] sm:$0xff] %v311_v32  ;;  %824 = vst [vmem:[#allocation5 + $0x908] sm:$0xff] %v312_v33  ;;  %v314_v35 = vld [vmem:[#allocation2 + $0x918] sm:$0xff] }
  0xa0   :  { %825 = vst [vmem:[#allocation5 + $0x910] sm:$0xff] %v313_v34  ;;  %v315_v36 = vld [vmem:[#allocation2 + $0x920] sm:$0xff]  ;;  %v316_v37 = vld [vmem:[#allocation2 + $0x928] sm:$0xff]  ;;  %826 = vst [vmem:[#allocation5 + $0x918] sm:$0xff] %v314_v35 }
  0xa1   :  { %827 = vst [vmem:[#allocation5 + $0x920] sm:$0xff] %v315_v36  ;;  %828 = vst [vmem:[#allocation5 + $0x928] sm:$0xff] %v316_v37  ;;  %v317_v38 = vld [vmem:[#allocation2 + $0x930] sm:$0xff]  ;;  %v318_v39 = vld [vmem:[#allocation2 + $0x938] sm:$0xff] }
  0xa2   :  { %v319_v40 = vld [vmem:[#allocation2 + $0x940] sm:$0xff]  ;;  %829 = vst [vmem:[#allocation5 + $0x930] sm:$0xff] %v317_v38  ;;  %830 = vst [vmem:[#allocation5 + $0x938] sm:$0xff] %v318_v39  ;;  %v320_v41 = vld [vmem:[#allocation2 + $0x948] sm:$0xff] }
  0xa3   :  { %831 = vst [vmem:[#allocation5 + $0x940] sm:$0xff] %v319_v40  ;;  %v321_v42 = vld [vmem:[#allocation2 + $0x950] sm:$0xff]  ;;  %v322_v43 = vld [vmem:[#allocation2 + $0x958] sm:$0xff]  ;;  %832 = vst [vmem:[#allocation5 + $0x948] sm:$0xff] %v320_v41 }
  0xa4   :  { %833 = vst [vmem:[#allocation5 + $0x950] sm:$0xff] %v321_v42  ;;  %834 = vst [vmem:[#allocation5 + $0x958] sm:$0xff] %v322_v43  ;;  %v323_v44 = vld [vmem:[#allocation2 + $0x960] sm:$0xff]  ;;  %v324_v45 = vld [vmem:[#allocation2 + $0x968] sm:$0xff] }
  0xa5   :  { %v325_v46 = vld [vmem:[#allocation2 + $0x970] sm:$0xff]  ;;  %835 = vst [vmem:[#allocation5 + $0x960] sm:$0xff] %v323_v44  ;;  %836 = vst [vmem:[#allocation5 + $0x968] sm:$0xff] %v324_v45  ;;  %v326_v47 = vld [vmem:[#allocation2 + $0x978] sm:$0xff] }
  0xa6   :  { %837 = vst [vmem:[#allocation5 + $0x970] sm:$0xff] %v325_v46  ;;  %v327_v48 = vld [vmem:[#allocation2 + $0x980] sm:$0xff]  ;;  %v328_v49 = vld [vmem:[#allocation2 + $0x988] sm:$0xff]  ;;  %838 = vst [vmem:[#allocation5 + $0x978] sm:$0xff] %v326_v47 }
  0xa7   :  { %839 = vst [vmem:[#allocation5 + $0x980] sm:$0xff] %v327_v48  ;;  %840 = vst [vmem:[#allocation5 + $0x988] sm:$0xff] %v328_v49  ;;  %v329_v50 = vld [vmem:[#allocation2 + $0x990] sm:$0xff]  ;;  %v330_v51 = vld [vmem:[#allocation2 + $0x998] sm:$0xff] }
  0xa8   :  { %v331_v52 = vld [vmem:[#allocation2 + $0x9a0] sm:$0xff]  ;;  %841 = vst [vmem:[#allocation5 + $0x990] sm:$0xff] %v329_v50  ;;  %842 = vst [vmem:[#allocation5 + $0x998] sm:$0xff] %v330_v51  ;;  %v332_v53 = vld [vmem:[#allocation2 + $0x9a8] sm:$0xff] }
  0xa9   :  { %843 = vst [vmem:[#allocation5 + $0x9a0] sm:$0xff] %v331_v52  ;;  %v333_v54 = vld [vmem:[#allocation2 + $0x9b0] sm:$0xff]  ;;  %v334_v55 = vld [vmem:[#allocation2 + $0x9b8] sm:$0xff]  ;;  %844 = vst [vmem:[#allocation5 + $0x9a8] sm:$0xff] %v332_v53 }
  0xaa   :  { %845 = vst [vmem:[#allocation5 + $0x9b0] sm:$0xff] %v333_v54  ;;  %846 = vst [vmem:[#allocation5 + $0x9b8] sm:$0xff] %v334_v55  ;;  %v335_v56 = vld [vmem:[#allocation2 + $0x9c0] sm:$0xff]  ;;  %v336_v57 = vld [vmem:[#allocation2 + $0x9c8] sm:$0xff] }
  0xab   :  { %v337_v58 = vld [vmem:[#allocation2 + $0x9d0] sm:$0xff]  ;;  %847 = vst [vmem:[#allocation5 + $0x9c0] sm:$0xff] %v335_v56  ;;  %848 = vst [vmem:[#allocation5 + $0x9c8] sm:$0xff] %v336_v57  ;;  %v338_v59 = vld [vmem:[#allocation2 + $0x9d8] sm:$0xff] }
  0xac   :  { %849 = vst [vmem:[#allocation5 + $0x9d0] sm:$0xff] %v337_v58  ;;  %v339_v60 = vld [vmem:[#allocation2 + $0x9e0] sm:$0xff]  ;;  %v340_v61 = vld [vmem:[#allocation2 + $0x9e8] sm:$0xff]  ;;  %850 = vst [vmem:[#allocation5 + $0x9d8] sm:$0xff] %v338_v59 }
  0xad   :  { %851 = vst [vmem:[#allocation5 + $0x9e0] sm:$0xff] %v339_v60  ;;  %852 = vst [vmem:[#allocation5 + $0x9e8] sm:$0xff] %v340_v61  ;;  %v341_v62 = vld [vmem:[#allocation2 + $0x9f0] sm:$0xff]  ;;  %v342_v63 = vld [vmem:[#allocation2 + $0x9f8] sm:$0xff] }
  0xae   :  { %v343_v0 = vld [vmem:[#allocation2 + $0xa00] sm:$0xff]  ;;  %853 = vst [vmem:[#allocation5 + $0x9f0] sm:$0xff] %v341_v62  ;;  %854 = vst [vmem:[#allocation5 + $0x9f8] sm:$0xff] %v342_v63  ;;  %v344_v1 = vld [vmem:[#allocation2 + $0xa08] sm:$0xff] }
  0xaf   :  { %855 = vst [vmem:[#allocation5 + $0xa00] sm:$0xff] %v343_v0  ;;  %v345_v2 = vld [vmem:[#allocation2 + $0xa10] sm:$0xff]  ;;  %v346_v3 = vld [vmem:[#allocation2 + $0xa18] sm:$0xff]  ;;  %856 = vst [vmem:[#allocation5 + $0xa08] sm:$0xff] %v344_v1 }
  0xb0   :  { %857 = vst [vmem:[#allocation5 + $0xa10] sm:$0xff] %v345_v2  ;;  %858 = vst [vmem:[#allocation5 + $0xa18] sm:$0xff] %v346_v3  ;;  %v347_v4 = vld [vmem:[#allocation2 + $0xa20] sm:$0xff]  ;;  %v348_v5 = vld [vmem:[#allocation2 + $0xa28] sm:$0xff] }
  0xb1   :  { %v349_v6 = vld [vmem:[#allocation2 + $0xa30] sm:$0xff]  ;;  %859 = vst [vmem:[#allocation5 + $0xa20] sm:$0xff] %v347_v4  ;;  %860 = vst [vmem:[#allocation5 + $0xa28] sm:$0xff] %v348_v5  ;;  %v350_v7 = vld [vmem:[#allocation2 + $0xa38] sm:$0xff] }
  0xb2   :  { %861 = vst [vmem:[#allocation5 + $0xa30] sm:$0xff] %v349_v6  ;;  %v351_v8 = vld [vmem:[#allocation2 + $0xa40] sm:$0xff]  ;;  %v352_v9 = vld [vmem:[#allocation2 + $0xa48] sm:$0xff]  ;;  %862 = vst [vmem:[#allocation5 + $0xa38] sm:$0xff] %v350_v7 }
  0xb3   :  { %863 = vst [vmem:[#allocation5 + $0xa40] sm:$0xff] %v351_v8  ;;  %864 = vst [vmem:[#allocation5 + $0xa48] sm:$0xff] %v352_v9  ;;  %v353_v10 = vld [vmem:[#allocation2 + $0xa50] sm:$0xff]  ;;  %v354_v11 = vld [vmem:[#allocation2 + $0xa58] sm:$0xff] }
  0xb4   :  { %v355_v12 = vld [vmem:[#allocation2 + $0xa60] sm:$0xff]  ;;  %865 = vst [vmem:[#allocation5 + $0xa50] sm:$0xff] %v353_v10  ;;  %866 = vst [vmem:[#allocation5 + $0xa58] sm:$0xff] %v354_v11  ;;  %v356_v13 = vld [vmem:[#allocation2 + $0xa68] sm:$0xff] }
  0xb5   :  { %867 = vst [vmem:[#allocation5 + $0xa60] sm:$0xff] %v355_v12  ;;  %v357_v14 = vld [vmem:[#allocation2 + $0xa70] sm:$0xff]  ;;  %v358_v15 = vld [vmem:[#allocation2 + $0xa78] sm:$0xff]  ;;  %868 = vst [vmem:[#allocation5 + $0xa68] sm:$0xff] %v356_v13 }
  0xb6   :  { %869 = vst [vmem:[#allocation5 + $0xa70] sm:$0xff] %v357_v14  ;;  %870 = vst [vmem:[#allocation5 + $0xa78] sm:$0xff] %v358_v15  ;;  %v359_v16 = vld [vmem:[#allocation2 + $0xa80] sm:$0xff]  ;;  %v360_v17 = vld [vmem:[#allocation2 + $0xa88] sm:$0xff] }
  0xb7   :  { %v361_v18 = vld [vmem:[#allocation2 + $0xa90] sm:$0xff]  ;;  %871 = vst [vmem:[#allocation5 + $0xa80] sm:$0xff] %v359_v16  ;;  %872 = vst [vmem:[#allocation5 + $0xa88] sm:$0xff] %v360_v17  ;;  %v362_v19 = vld [vmem:[#allocation2 + $0xa98] sm:$0xff] }
  0xb8   :  { %873 = vst [vmem:[#allocation5 + $0xa90] sm:$0xff] %v361_v18  ;;  %v363_v20 = vld [vmem:[#allocation2 + $0xaa0] sm:$0xff]  ;;  %v364_v21 = vld [vmem:[#allocation2 + $0xaa8] sm:$0xff]  ;;  %874 = vst [vmem:[#allocation5 + $0xa98] sm:$0xff] %v362_v19 }
  0xb9   :  { %875 = vst [vmem:[#allocation5 + $0xaa0] sm:$0xff] %v363_v20  ;;  %876 = vst [vmem:[#allocation5 + $0xaa8] sm:$0xff] %v364_v21  ;;  %v365_v22 = vld [vmem:[#allocation2 + $0xab0] sm:$0xff]  ;;  %v366_v23 = vld [vmem:[#allocation2 + $0xab8] sm:$0xff] }
  0xba   :  { %v367_v24 = vld [vmem:[#allocation2 + $0xac0] sm:$0xff]  ;;  %877 = vst [vmem:[#allocation5 + $0xab0] sm:$0xff] %v365_v22  ;;  %878 = vst [vmem:[#allocation5 + $0xab8] sm:$0xff] %v366_v23  ;;  %v368_v25 = vld [vmem:[#allocation2 + $0xac8] sm:$0xff] }
  0xbb   :  { %879 = vst [vmem:[#allocation5 + $0xac0] sm:$0xff] %v367_v24  ;;  %v369_v26 = vld [vmem:[#allocation2 + $0xad0] sm:$0xff]  ;;  %v370_v27 = vld [vmem:[#allocation2 + $0xad8] sm:$0xff]  ;;  %880 = vst [vmem:[#allocation5 + $0xac8] sm:$0xff] %v368_v25 }
  0xbc   :  { %881 = vst [vmem:[#allocation5 + $0xad0] sm:$0xff] %v369_v26  ;;  %882 = vst [vmem:[#allocation5 + $0xad8] sm:$0xff] %v370_v27  ;;  %v371_v28 = vld [vmem:[#allocation2 + $0xae0] sm:$0xff]  ;;  %v372_v29 = vld [vmem:[#allocation2 + $0xae8] sm:$0xff] }
  0xbd   :  { %v373_v30 = vld [vmem:[#allocation2 + $0xaf0] sm:$0xff]  ;;  %883 = vst [vmem:[#allocation5 + $0xae0] sm:$0xff] %v371_v28  ;;  %884 = vst [vmem:[#allocation5 + $0xae8] sm:$0xff] %v372_v29  ;;  %v374_v31 = vld [vmem:[#allocation2 + $0xaf8] sm:$0xff] }
  0xbe   :  { %885 = vst [vmem:[#allocation5 + $0xaf0] sm:$0xff] %v373_v30  ;;  %v375_v32 = vld [vmem:[#allocation2 + $0xb00] sm:$0xff]  ;;  %v376_v33 = vld [vmem:[#allocation2 + $0xb08] sm:$0xff]  ;;  %886 = vst [vmem:[#allocation5 + $0xaf8] sm:$0xff] %v374_v31 }
  0xbf   :  { %887 = vst [vmem:[#allocation5 + $0xb00] sm:$0xff] %v375_v32  ;;  %888 = vst [vmem:[#allocation5 + $0xb08] sm:$0xff] %v376_v33  ;;  %v377_v34 = vld [vmem:[#allocation2 + $0xb10] sm:$0xff]  ;;  %v378_v35 = vld [vmem:[#allocation2 + $0xb18] sm:$0xff] }
  0xc0   :  { %v379_v36 = vld [vmem:[#allocation2 + $0xb20] sm:$0xff]  ;;  %889 = vst [vmem:[#allocation5 + $0xb10] sm:$0xff] %v377_v34  ;;  %890 = vst [vmem:[#allocation5 + $0xb18] sm:$0xff] %v378_v35  ;;  %v380_v37 = vld [vmem:[#allocation2 + $0xb28] sm:$0xff] }
  0xc1   :  { %891 = vst [vmem:[#allocation5 + $0xb20] sm:$0xff] %v379_v36  ;;  %v381_v38 = vld [vmem:[#allocation2 + $0xb30] sm:$0xff]  ;;  %v382_v39 = vld [vmem:[#allocation2 + $0xb38] sm:$0xff]  ;;  %892 = vst [vmem:[#allocation5 + $0xb28] sm:$0xff] %v380_v37 }
  0xc2   :  { %893 = vst [vmem:[#allocation5 + $0xb30] sm:$0xff] %v381_v38  ;;  %894 = vst [vmem:[#allocation5 + $0xb38] sm:$0xff] %v382_v39  ;;  %v383_v40 = vld [vmem:[#allocation2 + $0xb40] sm:$0xff]  ;;  %v384_v41 = vld [vmem:[#allocation2 + $0xb48] sm:$0xff] }
  0xc3   :  { %v385_v42 = vld [vmem:[#allocation2 + $0xb50] sm:$0xff]  ;;  %895 = vst [vmem:[#allocation5 + $0xb40] sm:$0xff] %v383_v40  ;;  %896 = vst [vmem:[#allocation5 + $0xb48] sm:$0xff] %v384_v41  ;;  %v386_v43 = vld [vmem:[#allocation2 + $0xb58] sm:$0xff] }
  0xc4   :  { %897 = vst [vmem:[#allocation5 + $0xb50] sm:$0xff] %v385_v42  ;;  %v387_v44 = vld [vmem:[#allocation2 + $0xb60] sm:$0xff]  ;;  %v388_v45 = vld [vmem:[#allocation2 + $0xb68] sm:$0xff]  ;;  %898 = vst [vmem:[#allocation5 + $0xb58] sm:$0xff] %v386_v43 }
  0xc5   :  { %899 = vst [vmem:[#allocation5 + $0xb60] sm:$0xff] %v387_v44  ;;  %900 = vst [vmem:[#allocation5 + $0xb68] sm:$0xff] %v388_v45  ;;  %v389_v46 = vld [vmem:[#allocation2 + $0xb70] sm:$0xff]  ;;  %v390_v47 = vld [vmem:[#allocation2 + $0xb78] sm:$0xff] }
  0xc6   :  { %v391_v48 = vld [vmem:[#allocation2 + $0xb80] sm:$0xff]  ;;  %901 = vst [vmem:[#allocation5 + $0xb70] sm:$0xff] %v389_v46  ;;  %902 = vst [vmem:[#allocation5 + $0xb78] sm:$0xff] %v390_v47  ;;  %v392_v49 = vld [vmem:[#allocation2 + $0xb88] sm:$0xff] }
  0xc7   :  { %903 = vst [vmem:[#allocation5 + $0xb80] sm:$0xff] %v391_v48  ;;  %v393_v50 = vld [vmem:[#allocation2 + $0xb90] sm:$0xff]  ;;  %v394_v51 = vld [vmem:[#allocation2 + $0xb98] sm:$0xff]  ;;  %904 = vst [vmem:[#allocation5 + $0xb88] sm:$0xff] %v392_v49 }
  0xc8   :  { %905 = vst [vmem:[#allocation5 + $0xb90] sm:$0xff] %v393_v50  ;;  %906 = vst [vmem:[#allocation5 + $0xb98] sm:$0xff] %v394_v51  ;;  %v395_v52 = vld [vmem:[#allocation2 + $0xba0] sm:$0xff]  ;;  %v396_v53 = vld [vmem:[#allocation2 + $0xba8] sm:$0xff] }
  0xc9   :  { %v397_v54 = vld [vmem:[#allocation2 + $0xbb0] sm:$0xff]  ;;  %907 = vst [vmem:[#allocation5 + $0xba0] sm:$0xff] %v395_v52  ;;  %908 = vst [vmem:[#allocation5 + $0xba8] sm:$0xff] %v396_v53  ;;  %v398_v55 = vld [vmem:[#allocation2 + $0xbb8] sm:$0xff] }
  0xca   :  { %909 = vst [vmem:[#allocation5 + $0xbb0] sm:$0xff] %v397_v54  ;;  %v399_v56 = vld [vmem:[#allocation2 + $0xbc0] sm:$0xff]  ;;  %v400_v57 = vld [vmem:[#allocation2 + $0xbc8] sm:$0xff]  ;;  %910 = vst [vmem:[#allocation5 + $0xbb8] sm:$0xff] %v398_v55 }
  0xcb   :  { %911 = vst [vmem:[#allocation5 + $0xbc0] sm:$0xff] %v399_v56  ;;  %912 = vst [vmem:[#allocation5 + $0xbc8] sm:$0xff] %v400_v57  ;;  %v401_v58 = vld [vmem:[#allocation2 + $0xbd0] sm:$0xff]  ;;  %v402_v59 = vld [vmem:[#allocation2 + $0xbd8] sm:$0xff] }
  0xcc   :  { %v403_v60 = vld [vmem:[#allocation2 + $0xbe0] sm:$0xff]  ;;  %913 = vst [vmem:[#allocation5 + $0xbd0] sm:$0xff] %v401_v58  ;;  %914 = vst [vmem:[#allocation5 + $0xbd8] sm:$0xff] %v402_v59  ;;  %v404_v61 = vld [vmem:[#allocation2 + $0xbe8] sm:$0xff] }
  0xcd   :  { %915 = vst [vmem:[#allocation5 + $0xbe0] sm:$0xff] %v403_v60  ;;  %v405_v62 = vld [vmem:[#allocation2 + $0xbf0] sm:$0xff]  ;;  %v406_v63 = vld [vmem:[#allocation2 + $0xbf8] sm:$0xff]  ;;  %916 = vst [vmem:[#allocation5 + $0xbe8] sm:$0xff] %v404_v61 }
  0xce   :  { %917 = vst [vmem:[#allocation5 + $0xbf0] sm:$0xff] %v405_v62  ;;  %918 = vst [vmem:[#allocation5 + $0xbf8] sm:$0xff] %v406_v63  ;;  %v407_v0 = vld [vmem:[#allocation2 + $0xc00] sm:$0xff]  ;;  %v408_v1 = vld [vmem:[#allocation2 + $0xc08] sm:$0xff] }
  0xcf   :  { %v409_v2 = vld [vmem:[#allocation2 + $0xc10] sm:$0xff]  ;;  %919 = vst [vmem:[#allocation5 + $0xc00] sm:$0xff] %v407_v0  ;;  %920 = vst [vmem:[#allocation5 + $0xc08] sm:$0xff] %v408_v1  ;;  %v410_v3 = vld [vmem:[#allocation2 + $0xc18] sm:$0xff] }
  0xd0   :  { %921 = vst [vmem:[#allocation5 + $0xc10] sm:$0xff] %v409_v2  ;;  %v411_v4 = vld [vmem:[#allocation2 + $0xc20] sm:$0xff]  ;;  %v412_v5 = vld [vmem:[#allocation2 + $0xc28] sm:$0xff]  ;;  %922 = vst [vmem:[#allocation5 + $0xc18] sm:$0xff] %v410_v3 }
  0xd1   :  { %923 = vst [vmem:[#allocation5 + $0xc20] sm:$0xff] %v411_v4  ;;  %924 = vst [vmem:[#allocation5 + $0xc28] sm:$0xff] %v412_v5  ;;  %v413_v6 = vld [vmem:[#allocation2 + $0xc30] sm:$0xff]  ;;  %v414_v7 = vld [vmem:[#allocation2 + $0xc38] sm:$0xff] }
  0xd2   :  { %v415_v8 = vld [vmem:[#allocation2 + $0xc40] sm:$0xff]  ;;  %925 = vst [vmem:[#allocation5 + $0xc30] sm:$0xff] %v413_v6  ;;  %926 = vst [vmem:[#allocation5 + $0xc38] sm:$0xff] %v414_v7  ;;  %v416_v9 = vld [vmem:[#allocation2 + $0xc48] sm:$0xff] }
  0xd3   :  { %927 = vst [vmem:[#allocation5 + $0xc40] sm:$0xff] %v415_v8  ;;  %v417_v10 = vld [vmem:[#allocation2 + $0xc50] sm:$0xff]  ;;  %v418_v11 = vld [vmem:[#allocation2 + $0xc58] sm:$0xff]  ;;  %928 = vst [vmem:[#allocation5 + $0xc48] sm:$0xff] %v416_v9 }
  0xd4   :  { %929 = vst [vmem:[#allocation5 + $0xc50] sm:$0xff] %v417_v10  ;;  %930 = vst [vmem:[#allocation5 + $0xc58] sm:$0xff] %v418_v11  ;;  %v419_v12 = vld [vmem:[#allocation2 + $0xc60] sm:$0xff]  ;;  %v420_v13 = vld [vmem:[#allocation2 + $0xc68] sm:$0xff] }
  0xd5   :  { %v421_v14 = vld [vmem:[#allocation2 + $0xc70] sm:$0xff]  ;;  %931 = vst [vmem:[#allocation5 + $0xc60] sm:$0xff] %v419_v12  ;;  %932 = vst [vmem:[#allocation5 + $0xc68] sm:$0xff] %v420_v13  ;;  %v422_v15 = vld [vmem:[#allocation2 + $0xc78] sm:$0xff] }
  0xd6   :  { %933 = vst [vmem:[#allocation5 + $0xc70] sm:$0xff] %v421_v14  ;;  %v423_v16 = vld [vmem:[#allocation2 + $0xc80] sm:$0xff]  ;;  %v424_v17 = vld [vmem:[#allocation2 + $0xc88] sm:$0xff]  ;;  %934 = vst [vmem:[#allocation5 + $0xc78] sm:$0xff] %v422_v15 }
  0xd7   :  { %935 = vst [vmem:[#allocation5 + $0xc80] sm:$0xff] %v423_v16  ;;  %936 = vst [vmem:[#allocation5 + $0xc88] sm:$0xff] %v424_v17  ;;  %v425_v18 = vld [vmem:[#allocation2 + $0xc90] sm:$0xff]  ;;  %v426_v19 = vld [vmem:[#allocation2 + $0xc98] sm:$0xff] }
  0xd8   :  { %v427_v20 = vld [vmem:[#allocation2 + $0xca0] sm:$0xff]  ;;  %937 = vst [vmem:[#allocation5 + $0xc90] sm:$0xff] %v425_v18  ;;  %938 = vst [vmem:[#allocation5 + $0xc98] sm:$0xff] %v426_v19  ;;  %v428_v21 = vld [vmem:[#allocation2 + $0xca8] sm:$0xff] }
  0xd9   :  { %939 = vst [vmem:[#allocation5 + $0xca0] sm:$0xff] %v427_v20  ;;  %v429_v22 = vld [vmem:[#allocation2 + $0xcb0] sm:$0xff]  ;;  %v430_v23 = vld [vmem:[#allocation2 + $0xcb8] sm:$0xff]  ;;  %940 = vst [vmem:[#allocation5 + $0xca8] sm:$0xff] %v428_v21 }
  0xda   :  { %941 = vst [vmem:[#allocation5 + $0xcb0] sm:$0xff] %v429_v22  ;;  %942 = vst [vmem:[#allocation5 + $0xcb8] sm:$0xff] %v430_v23  ;;  %v431_v24 = vld [vmem:[#allocation2 + $0xcc0] sm:$0xff]  ;;  %v432_v25 = vld [vmem:[#allocation2 + $0xcc8] sm:$0xff] }
  0xdb   :  { %v433_v26 = vld [vmem:[#allocation2 + $0xcd0] sm:$0xff]  ;;  %943 = vst [vmem:[#allocation5 + $0xcc0] sm:$0xff] %v431_v24  ;;  %944 = vst [vmem:[#allocation5 + $0xcc8] sm:$0xff] %v432_v25  ;;  %v434_v27 = vld [vmem:[#allocation2 + $0xcd8] sm:$0xff] }
  0xdc   :  { %945 = vst [vmem:[#allocation5 + $0xcd0] sm:$0xff] %v433_v26  ;;  %v435_v28 = vld [vmem:[#allocation2 + $0xce0] sm:$0xff]  ;;  %v436_v29 = vld [vmem:[#allocation2 + $0xce8] sm:$0xff]  ;;  %946 = vst [vmem:[#allocation5 + $0xcd8] sm:$0xff] %v434_v27 }
  0xdd   :  { %947 = vst [vmem:[#allocation5 + $0xce0] sm:$0xff] %v435_v28  ;;  %948 = vst [vmem:[#allocation5 + $0xce8] sm:$0xff] %v436_v29  ;;  %v437_v30 = vld [vmem:[#allocation2 + $0xcf0] sm:$0xff]  ;;  %v438_v31 = vld [vmem:[#allocation2 + $0xcf8] sm:$0xff] }
  0xde   :  { %v439_v32 = vld [vmem:[#allocation2 + $0xd00] sm:$0xff]  ;;  %949 = vst [vmem:[#allocation5 + $0xcf0] sm:$0xff] %v437_v30  ;;  %950 = vst [vmem:[#allocation5 + $0xcf8] sm:$0xff] %v438_v31  ;;  %v440_v33 = vld [vmem:[#allocation2 + $0xd08] sm:$0xff] }
  0xdf   :  { %951 = vst [vmem:[#allocation5 + $0xd00] sm:$0xff] %v439_v32  ;;  %v441_v34 = vld [vmem:[#allocation2 + $0xd10] sm:$0xff]  ;;  %v442_v35 = vld [vmem:[#allocation2 + $0xd18] sm:$0xff]  ;;  %952 = vst [vmem:[#allocation5 + $0xd08] sm:$0xff] %v440_v33 }
  0xe0   :  { %953 = vst [vmem:[#allocation5 + $0xd10] sm:$0xff] %v441_v34  ;;  %954 = vst [vmem:[#allocation5 + $0xd18] sm:$0xff] %v442_v35  ;;  %v443_v36 = vld [vmem:[#allocation2 + $0xd20] sm:$0xff]  ;;  %v444_v37 = vld [vmem:[#allocation2 + $0xd28] sm:$0xff] }
  0xe1   :  { %v445_v38 = vld [vmem:[#allocation2 + $0xd30] sm:$0xff]  ;;  %955 = vst [vmem:[#allocation5 + $0xd20] sm:$0xff] %v443_v36  ;;  %956 = vst [vmem:[#allocation5 + $0xd28] sm:$0xff] %v444_v37  ;;  %v446_v39 = vld [vmem:[#allocation2 + $0xd38] sm:$0xff] }
  0xe2   :  { %957 = vst [vmem:[#allocation5 + $0xd30] sm:$0xff] %v445_v38  ;;  %v447_v40 = vld [vmem:[#allocation2 + $0xd40] sm:$0xff]  ;;  %v448_v41 = vld [vmem:[#allocation2 + $0xd48] sm:$0xff]  ;;  %958 = vst [vmem:[#allocation5 + $0xd38] sm:$0xff] %v446_v39 }
  0xe3   :  { %959 = vst [vmem:[#allocation5 + $0xd40] sm:$0xff] %v447_v40  ;;  %960 = vst [vmem:[#allocation5 + $0xd48] sm:$0xff] %v448_v41  ;;  %v449_v42 = vld [vmem:[#allocation2 + $0xd50] sm:$0xff]  ;;  %v450_v43 = vld [vmem:[#allocation2 + $0xd58] sm:$0xff] }
  0xe4   :  { %v451_v44 = vld [vmem:[#allocation2 + $0xd60] sm:$0xff]  ;;  %961 = vst [vmem:[#allocation5 + $0xd50] sm:$0xff] %v449_v42  ;;  %962 = vst [vmem:[#allocation5 + $0xd58] sm:$0xff] %v450_v43  ;;  %v452_v45 = vld [vmem:[#allocation2 + $0xd68] sm:$0xff] }
  0xe5   :  { %963 = vst [vmem:[#allocation5 + $0xd60] sm:$0xff] %v451_v44  ;;  %v453_v46 = vld [vmem:[#allocation2 + $0xd70] sm:$0xff]  ;;  %v454_v47 = vld [vmem:[#allocation2 + $0xd78] sm:$0xff]  ;;  %964 = vst [vmem:[#allocation5 + $0xd68] sm:$0xff] %v452_v45 }
  0xe6   :  { %965 = vst [vmem:[#allocation5 + $0xd70] sm:$0xff] %v453_v46  ;;  %966 = vst [vmem:[#allocation5 + $0xd78] sm:$0xff] %v454_v47  ;;  %v455_v48 = vld [vmem:[#allocation2 + $0xd80] sm:$0xff]  ;;  %v456_v49 = vld [vmem:[#allocation2 + $0xd88] sm:$0xff] }
  0xe7   :  { %v457_v50 = vld [vmem:[#allocation2 + $0xd90] sm:$0xff]  ;;  %967 = vst [vmem:[#allocation5 + $0xd80] sm:$0xff] %v455_v48  ;;  %968 = vst [vmem:[#allocation5 + $0xd88] sm:$0xff] %v456_v49  ;;  %v458_v51 = vld [vmem:[#allocation2 + $0xd98] sm:$0xff] }
  0xe8   :  { %969 = vst [vmem:[#allocation5 + $0xd90] sm:$0xff] %v457_v50  ;;  %v459_v52 = vld [vmem:[#allocation2 + $0xda0] sm:$0xff]  ;;  %v460_v53 = vld [vmem:[#allocation2 + $0xda8] sm:$0xff]  ;;  %970 = vst [vmem:[#allocation5 + $0xd98] sm:$0xff] %v458_v51 }
  0xe9   :  { %971 = vst [vmem:[#allocation5 + $0xda0] sm:$0xff] %v459_v52  ;;  %972 = vst [vmem:[#allocation5 + $0xda8] sm:$0xff] %v460_v53  ;;  %v461_v54 = vld [vmem:[#allocation2 + $0xdb0] sm:$0xff]  ;;  %v462_v55 = vld [vmem:[#allocation2 + $0xdb8] sm:$0xff] }
  0xea   :  { %v463_v56 = vld [vmem:[#allocation2 + $0xdc0] sm:$0xff]  ;;  %973 = vst [vmem:[#allocation5 + $0xdb0] sm:$0xff] %v461_v54  ;;  %974 = vst [vmem:[#allocation5 + $0xdb8] sm:$0xff] %v462_v55  ;;  %v464_v57 = vld [vmem:[#allocation2 + $0xdc8] sm:$0xff] }
  0xeb   :  { %975 = vst [vmem:[#allocation5 + $0xdc0] sm:$0xff] %v463_v56  ;;  %v465_v58 = vld [vmem:[#allocation2 + $0xdd0] sm:$0xff]  ;;  %v466_v59 = vld [vmem:[#allocation2 + $0xdd8] sm:$0xff]  ;;  %976 = vst [vmem:[#allocation5 + $0xdc8] sm:$0xff] %v464_v57 }
  0xec   :  { %977 = vst [vmem:[#allocation5 + $0xdd0] sm:$0xff] %v465_v58  ;;  %978 = vst [vmem:[#allocation5 + $0xdd8] sm:$0xff] %v466_v59  ;;  %v467_v60 = vld [vmem:[#allocation2 + $0xde0] sm:$0xff]  ;;  %v468_v61 = vld [vmem:[#allocation2 + $0xde8] sm:$0xff] }
  0xed   :  { %v469_v62 = vld [vmem:[#allocation2 + $0xdf0] sm:$0xff]  ;;  %979 = vst [vmem:[#allocation5 + $0xde0] sm:$0xff] %v467_v60  ;;  %980 = vst [vmem:[#allocation5 + $0xde8] sm:$0xff] %v468_v61  ;;  %v470_v63 = vld [vmem:[#allocation2 + $0xdf8] sm:$0xff] }
  0xee   :  { %981 = vst [vmem:[#allocation5 + $0xdf0] sm:$0xff] %v469_v62  ;;  %v471_v0 = vld [vmem:[#allocation2 + $0xe00] sm:$0xff]  ;;  %v472_v1 = vld [vmem:[#allocation2 + $0xe08] sm:$0xff]  ;;  %982 = vst [vmem:[#allocation5 + $0xdf8] sm:$0xff] %v470_v63 }
  0xef   :  { %983 = vst [vmem:[#allocation5 + $0xe00] sm:$0xff] %v471_v0  ;;  %984 = vst [vmem:[#allocation5 + $0xe08] sm:$0xff] %v472_v1  ;;  %v473_v2 = vld [vmem:[#allocation2 + $0xe10] sm:$0xff]  ;;  %v474_v3 = vld [vmem:[#allocation2 + $0xe18] sm:$0xff] }
  0xf0   :  { %v475_v4 = vld [vmem:[#allocation2 + $0xe20] sm:$0xff]  ;;  %985 = vst [vmem:[#allocation5 + $0xe10] sm:$0xff] %v473_v2  ;;  %986 = vst [vmem:[#allocation5 + $0xe18] sm:$0xff] %v474_v3  ;;  %v476_v5 = vld [vmem:[#allocation2 + $0xe28] sm:$0xff] }
  0xf1   :  { %987 = vst [vmem:[#allocation5 + $0xe20] sm:$0xff] %v475_v4  ;;  %v477_v6 = vld [vmem:[#allocation2 + $0xe30] sm:$0xff]  ;;  %v478_v7 = vld [vmem:[#allocation2 + $0xe38] sm:$0xff]  ;;  %988 = vst [vmem:[#allocation5 + $0xe28] sm:$0xff] %v476_v5 }
  0xf2   :  { %989 = vst [vmem:[#allocation5 + $0xe30] sm:$0xff] %v477_v6  ;;  %990 = vst [vmem:[#allocation5 + $0xe38] sm:$0xff] %v478_v7  ;;  %v479_v8 = vld [vmem:[#allocation2 + $0xe40] sm:$0xff]  ;;  %v480_v9 = vld [vmem:[#allocation2 + $0xe48] sm:$0xff] }
  0xf3   :  { %v481_v10 = vld [vmem:[#allocation2 + $0xe50] sm:$0xff]  ;;  %991 = vst [vmem:[#allocation5 + $0xe40] sm:$0xff] %v479_v8  ;;  %992 = vst [vmem:[#allocation5 + $0xe48] sm:$0xff] %v480_v9  ;;  %v482_v11 = vld [vmem:[#allocation2 + $0xe58] sm:$0xff] }
  0xf4   :  { %993 = vst [vmem:[#allocation5 + $0xe50] sm:$0xff] %v481_v10  ;;  %v483_v12 = vld [vmem:[#allocation2 + $0xe60] sm:$0xff]  ;;  %v484_v13 = vld [vmem:[#allocation2 + $0xe68] sm:$0xff]  ;;  %994 = vst [vmem:[#allocation5 + $0xe58] sm:$0xff] %v482_v11 }
  0xf5   :  { %995 = vst [vmem:[#allocation5 + $0xe60] sm:$0xff] %v483_v12  ;;  %996 = vst [vmem:[#allocation5 + $0xe68] sm:$0xff] %v484_v13  ;;  %v485_v14 = vld [vmem:[#allocation2 + $0xe70] sm:$0xff]  ;;  %v486_v15 = vld [vmem:[#allocation2 + $0xe78] sm:$0xff] }
  0xf6   :  { %v487_v16 = vld [vmem:[#allocation2 + $0xe80] sm:$0xff]  ;;  %997 = vst [vmem:[#allocation5 + $0xe70] sm:$0xff] %v485_v14  ;;  %998 = vst [vmem:[#allocation5 + $0xe78] sm:$0xff] %v486_v15  ;;  %v488_v17 = vld [vmem:[#allocation2 + $0xe88] sm:$0xff] }
  0xf7   :  { %999 = vst [vmem:[#allocation5 + $0xe80] sm:$0xff] %v487_v16  ;;  %v489_v18 = vld [vmem:[#allocation2 + $0xe90] sm:$0xff]  ;;  %v490_v19 = vld [vmem:[#allocation2 + $0xe98] sm:$0xff]  ;;  %1000 = vst [vmem:[#allocation5 + $0xe88] sm:$0xff] %v488_v17 }
  0xf8   :  { %1001 = vst [vmem:[#allocation5 + $0xe90] sm:$0xff] %v489_v18  ;;  %1002 = vst [vmem:[#allocation5 + $0xe98] sm:$0xff] %v490_v19  ;;  %v491_v20 = vld [vmem:[#allocation2 + $0xea0] sm:$0xff]  ;;  %v492_v21 = vld [vmem:[#allocation2 + $0xea8] sm:$0xff] }
  0xf9   :  { %v493_v22 = vld [vmem:[#allocation2 + $0xeb0] sm:$0xff]  ;;  %1003 = vst [vmem:[#allocation5 + $0xea0] sm:$0xff] %v491_v20  ;;  %1004 = vst [vmem:[#allocation5 + $0xea8] sm:$0xff] %v492_v21  ;;  %v494_v23 = vld [vmem:[#allocation2 + $0xeb8] sm:$0xff] }
  0xfa   :  { %1005 = vst [vmem:[#allocation5 + $0xeb0] sm:$0xff] %v493_v22  ;;  %v495_v24 = vld [vmem:[#allocation2 + $0xec0] sm:$0xff]  ;;  %v496_v25 = vld [vmem:[#allocation2 + $0xec8] sm:$0xff]  ;;  %1006 = vst [vmem:[#allocation5 + $0xeb8] sm:$0xff] %v494_v23 }
  0xfb   :  { %1007 = vst [vmem:[#allocation5 + $0xec0] sm:$0xff] %v495_v24  ;;  %1008 = vst [vmem:[#allocation5 + $0xec8] sm:$0xff] %v496_v25  ;;  %v497_v26 = vld [vmem:[#allocation2 + $0xed0] sm:$0xff]  ;;  %v498_v27 = vld [vmem:[#allocation2 + $0xed8] sm:$0xff] }
  0xfc   :  { %v499_v28 = vld [vmem:[#allocation2 + $0xee0] sm:$0xff]  ;;  %1009 = vst [vmem:[#allocation5 + $0xed0] sm:$0xff] %v497_v26  ;;  %1010 = vst [vmem:[#allocation5 + $0xed8] sm:$0xff] %v498_v27  ;;  %v500_v29 = vld [vmem:[#allocation2 + $0xee8] sm:$0xff] }
  0xfd   :  { %1011 = vst [vmem:[#allocation5 + $0xee0] sm:$0xff] %v499_v28  ;;  %v501_v30 = vld [vmem:[#allocation2 + $0xef0] sm:$0xff]  ;;  %v502_v31 = vld [vmem:[#allocation2 + $0xef8] sm:$0xff]  ;;  %1012 = vst [vmem:[#allocation5 + $0xee8] sm:$0xff] %v500_v29 }
  0xfe   :  { %1013 = vst [vmem:[#allocation5 + $0xef0] sm:$0xff] %v501_v30  ;;  %1014 = vst [vmem:[#allocation5 + $0xef8] sm:$0xff] %v502_v31  ;;  %v503_v32 = vld [vmem:[#allocation2 + $0xf00] sm:$0xff]  ;;  %v504_v33 = vld [vmem:[#allocation2 + $0xf08] sm:$0xff] }
  0xff   :  { %v505_v34 = vld [vmem:[#allocation2 + $0xf10] sm:$0xff]  ;;  %1015 = vst [vmem:[#allocation5 + $0xf00] sm:$0xff] %v503_v32  ;;  %1016 = vst [vmem:[#allocation5 + $0xf08] sm:$0xff] %v504_v33  ;;  %v506_v35 = vld [vmem:[#allocation2 + $0xf18] sm:$0xff] }
 0x100   :  { %1017 = vst [vmem:[#allocation5 + $0xf10] sm:$0xff] %v505_v34  ;;  %v507_v36 = vld [vmem:[#allocation2 + $0xf20] sm:$0xff]  ;;  %v508_v37 = vld [vmem:[#allocation2 + $0xf28] sm:$0xff]  ;;  %1018 = vst [vmem:[#allocation5 + $0xf18] sm:$0xff] %v506_v35 }
 0x101   :  { %1019 = vst [vmem:[#allocation5 + $0xf20] sm:$0xff] %v507_v36  ;;  %1020 = vst [vmem:[#allocation5 + $0xf28] sm:$0xff] %v508_v37  ;;  %v509_v38 = vld [vmem:[#allocation2 + $0xf30] sm:$0xff]  ;;  %v510_v39 = vld [vmem:[#allocation2 + $0xf38] sm:$0xff] }
 0x102   :  { %v511_v40 = vld [vmem:[#allocation2 + $0xf40] sm:$0xff]  ;;  %1021 = vst [vmem:[#allocation5 + $0xf30] sm:$0xff] %v509_v38  ;;  %1022 = vst [vmem:[#allocation5 + $0xf38] sm:$0xff] %v510_v39  ;;  %v512_v41 = vld [vmem:[#allocation2 + $0xf48] sm:$0xff] }
 0x103   :  { %1023 = vst [vmem:[#allocation5 + $0xf40] sm:$0xff] %v511_v40  ;;  %v513_v42 = vld [vmem:[#allocation2 + $0xf50] sm:$0xff]  ;;  %v514_v43 = vld [vmem:[#allocation2 + $0xf58] sm:$0xff]  ;;  %1024 = vst [vmem:[#allocation5 + $0xf48] sm:$0xff] %v512_v41 }
 0x104   :  { %1025 = vst [vmem:[#allocation5 + $0xf50] sm:$0xff] %v513_v42  ;;  %1026 = vst [vmem:[#allocation5 + $0xf58] sm:$0xff] %v514_v43  ;;  %v515_v44 = vld [vmem:[#allocation2 + $0xf60] sm:$0xff]  ;;  %v516_v45 = vld [vmem:[#allocation2 + $0xf68] sm:$0xff] }
 0x105   :  { %v517_v46 = vld [vmem:[#allocation2 + $0xf70] sm:$0xff]  ;;  %1027 = vst [vmem:[#allocation5 + $0xf60] sm:$0xff] %v515_v44  ;;  %1028 = vst [vmem:[#allocation5 + $0xf68] sm:$0xff] %v516_v45  ;;  %v518_v47 = vld [vmem:[#allocation2 + $0xf78] sm:$0xff] }
 0x106   :  { %1029 = vst [vmem:[#allocation5 + $0xf70] sm:$0xff] %v517_v46  ;;  %v519_v48 = vld [vmem:[#allocation2 + $0xf80] sm:$0xff]  ;;  %v520_v49 = vld [vmem:[#allocation2 + $0xf88] sm:$0xff]  ;;  %1030 = vst [vmem:[#allocation5 + $0xf78] sm:$0xff] %v518_v47 }
 0x107   :  { %1031 = vst [vmem:[#allocation5 + $0xf80] sm:$0xff] %v519_v48  ;;  %1032 = vst [vmem:[#allocation5 + $0xf88] sm:$0xff] %v520_v49  ;;  %v521_v50 = vld [vmem:[#allocation2 + $0xf90] sm:$0xff]  ;;  %v522_v51 = vld [vmem:[#allocation2 + $0xf98] sm:$0xff] }
 0x108   :  { %v523_v52 = vld [vmem:[#allocation2 + $0xfa0] sm:$0xff]  ;;  %1033 = vst [vmem:[#allocation5 + $0xf90] sm:$0xff] %v521_v50  ;;  %1034 = vst [vmem:[#allocation5 + $0xf98] sm:$0xff] %v522_v51  ;;  %v524_v53 = vld [vmem:[#allocation2 + $0xfa8] sm:$0xff] }
 0x109   :  { %1035 = vst [vmem:[#allocation5 + $0xfa0] sm:$0xff] %v523_v52  ;;  %v525_v54 = vld [vmem:[#allocation2 + $0xfb0] sm:$0xff]  ;;  %v526_v55 = vld [vmem:[#allocation2 + $0xfb8] sm:$0xff]  ;;  %1036 = vst [vmem:[#allocation5 + $0xfa8] sm:$0xff] %v524_v53 }
 0x10a   :  { %1037 = vst [vmem:[#allocation5 + $0xfb0] sm:$0xff] %v525_v54  ;;  %1038 = vst [vmem:[#allocation5 + $0xfb8] sm:$0xff] %v526_v55  ;;  %v527_v56 = vld [vmem:[#allocation2 + $0xfc0] sm:$0xff]  ;;  %v528_v57 = vld [vmem:[#allocation2 + $0xfc8] sm:$0xff] }
 0x10b   :  { %v529_v58 = vld [vmem:[#allocation2 + $0xfd0] sm:$0xff]  ;;  %1039 = vst [vmem:[#allocation5 + $0xfc0] sm:$0xff] %v527_v56  ;;  %1040 = vst [vmem:[#allocation5 + $0xfc8] sm:$0xff] %v528_v57  ;;  %v530_v59 = vld [vmem:[#allocation2 + $0xfd8] sm:$0xff] }
 0x10c   :  { %1041 = vst [vmem:[#allocation5 + $0xfd0] sm:$0xff] %v529_v58  ;;  %v531_v60 = vld [vmem:[#allocation2 + $0xfe0] sm:$0xff]  ;;  %v532_v61 = vld [vmem:[#allocation2 + $0xfe8] sm:$0xff]  ;;  %1042 = vst [vmem:[#allocation5 + $0xfd8] sm:$0xff] %v530_v59 }
 0x10d   :  { %1043 = vst [vmem:[#allocation5 + $0xfe0] sm:$0xff] %v531_v60  ;;  %1044 = vst [vmem:[#allocation5 + $0xfe8] sm:$0xff] %v532_v61  ;;  %v533_v62 = vld [vmem:[#allocation2 + $0xff0] sm:$0xff]  ;;  %v534_v63 = vld [vmem:[#allocation2 + $0xff8] sm:$0xff] }
 0x10e   :  { %1045 = vst [vmem:[#allocation5 + $0xff0] sm:$0xff] %v533_v62  ;;  %1046 = vst [vmem:[#allocation5 + $0xff8] sm:$0xff] %v534_v63 }
 0x10f   :  { %1099 = shalt.err (!%p1096_p9)
}
 0x110   :  { %1058 = dma.vmem_to_hbm [thread:$0]  %s1053_s13, 65536, %s1139_s1, [#allocation4], %s1113_s9, %s1113_s9, %s1114_s10  }
 0x111   :  { %1110 = dma.done.wait [#allocation4], 65536  }
 0x112   :  { %1111 = vsyncadd [#allocation4], 4294901760 }
 0x113   :  { %1062 = vsyncpa [#allocation3], 1 }
 0x114   :  { %1063 = vsyncpa [#allocation4], 1 }

</bundles_post_ra>
